<compile_context>
chip_gen: v5e
topology: v5e:2x2
jax: 0.10.0
libtpu: 0.0.40
codegen_flags: <defaults>
</compile_context>

<pallas_src>
import math
from functools import partial

import numpy as np
import jax
import jax.numpy as jnp
from jax.experimental import pallas as pl
from jax.experimental.pallas import tpu as pltpu

# ----------------------------- configuration ------------------------------
D_MODEL = 32
NHEAD = 2
DIM_FF = 64
NUM_LAYERS = 2
SEQ = 8
BATCH = 2
EPS = 1e-5          # PyTorch layer_norm_eps default
HEAD_DIM = D_MODEL // NHEAD
NEG_INF = -1e30


# ------------------------------ kernel math --------------------------------
def _layernorm(x, w, b, eps=EPS):
    mu = jnp.mean(x, axis=-1, keepdims=True)
    var = jnp.mean((x - mu) ** 2, axis=-1, keepdims=True)
    return (x - mu) * jax.lax.rsqrt(var + eps) * w + b


def _encoder_layer(x, same_batch, in_wT, in_b, out_wT, out_b, ln1_w, ln1_b,
                   ff1_wT, ff1_b, ff2_wT, ff2_b, ln2_w, ln2_b):
    """One post-norm TransformerEncoderLayer on the seq-major token matrix x."""
    SB, D = x.shape
    H = NHEAD
    Hd = D // H

    # ---- self-attention: QKV projection.  1/sqrt(Hd) is pre-folded into the
    # Q columns of in_wT / in_b on the host, so no activation scaling here. ----
    qkv = jnp.dot(x, in_wT, preferred_element_type=jnp.float32) + in_b   # (SB, 3D)

    # Attention over all tokens of all batches at once, per head (H=2 static
    # unroll).  Cross-batch pairs are removed with a block-diagonal mask,
    # which keeps everything in the native 2D (token, feature) layout:
    # no reshapes, no transposes, no per-batch slicing inside the kernel.
    # TODO(synk): attn_mask / src_key_padding_mask not implemented (None path only).
    head_outs = []
    for h in range(H):
        c0 = h * Hd
        q = qkv[:, c0:c0 + Hd]                    # (SB, Hd)
        k = qkv[:, D + c0:D + c0 + Hd]
        v = qkv[:, 2 * D + c0:2 * D + c0 + Hd]
        s = jnp.einsum('qc,kc->qk', q, k,
                       preferred_element_type=jnp.float32)               # (SB, SB)
        s = jnp.where(same_batch, s, NEG_INF)     # mask cross-batch attention
        s = s - jnp.max(s, axis=-1, keepdims=True)   # keep stable softmax
        p = jnp.exp(s)
        p = p * pl.reciprocal(jnp.sum(p, axis=-1, keepdims=True), approx=True)
        head_outs.append(jnp.dot(p, v, preferred_element_type=jnp.float32))
    attn = jnp.concatenate(head_outs, axis=-1)                           # (SB, D)
    attn = jnp.dot(attn, out_wT, preferred_element_type=jnp.float32) + out_b

    # ---- residual + LayerNorm1 (post-norm) ----
    h1 = _layernorm(x + attn, ln1_w, ln1_b)

    # ---- feed-forward: linear2(relu(linear1(h1))) ----
    ff = jnp.maximum(
        jnp.dot(h1, ff1_wT, preferred_element_type=jnp.float32) + ff1_b, 0.0)
    ff = jnp.dot(ff, ff2_wT, preferred_element_type=jnp.float32) + ff2_b

    # ---- residual + LayerNorm2 ----
    return _layernorm(h1 + ff, ln2_w, ln2_b)


def fused_encoder_kernel(use_final_norm,
                         x_ref,
                         in_w_ref, in_b_ref,      # (L, D, 3D), (L, 1, 3D)
                         out_w_ref, out_b_ref,    # (L, D, D),  (L, 1, D)
                         ln1_w_ref, ln1_b_ref,    # (L, 1, D)
                         ff1_w_ref, ff1_b_ref,    # (L, D, F),  (L, 1, F)
                         ff2_w_ref, ff2_b_ref,    # (L, F, D),  (L, 1, D)
                         ln2_w_ref, ln2_b_ref,    # (L, 1, D)
                         fn_w_ref, fn_b_ref,      # (1, D)
                         o_ref):
    x = x_ref[...]                                # (S*B, D), seq-major rows
    SB = x.shape[0]
    B = SB // SEQ
    # Block-diagonal same-batch mask built once (seq-major: batch id = row % B).
    rows = jax.lax.broadcasted_iota(jnp.int32, (SB, SB), 0)
    cols = jax.lax.broadcasted_iota(jnp.int32, (SB, SB), 1)
    same_batch = (rows % B) == (cols % B)

    for l in range(NUM_LAYERS):                   # static unroll over layers
        x = _encoder_layer(x, same_batch,
                           in_w_ref[l], in_b_ref[l],
                           out_w_ref[l], out_b_ref[l],
                           ln1_w_ref[l], ln1_b_ref[l],
                           ff1_w_ref[l], ff1_b_ref[l],
                           ff2_w_ref[l], ff2_b_ref[l],
                           ln2_w_ref[l], ln2_b_ref[l])
    if use_final_norm:
        x = _layernorm(x, fn_w_ref[...], fn_b_ref[...])
    o_ref[...] = x


# ------------------------------ wrapper ------------------------------------
def _vmem():
    return pl.BlockSpec(memory_space=pltpu.MemorySpace.VMEM)


def transformer_encoder_diff_init(src, layer_params, norm_params=None):
    """src: (S, B, D) as in PyTorch (batch_first=False)."""
    S, B, D = src.shape
    # Seq-major flat token matrix (row = s*B + b): a *contiguous* collapse of
    # (S, B, D) -> (S*B, D).  No host-side transpose launches around the kernel.
    x2d = src.reshape(S * B, D)

    scale = 1.0 / math.sqrt(D // NHEAD)

    def stk(fn):
        return jnp.stack([fn(p) for p in layer_params])

    args = (
        x2d,
        # pre-transposed once; 1/sqrt(Hd) folded into the Q block (cols [0:D])
        stk(lambda p: jnp.transpose(p["in_w"]).at[:, :D].multiply(scale)),
        stk(lambda p: p["in_b"].at[:, :D].multiply(scale)),
        stk(lambda p: jnp.transpose(p["out_w"])), stk(lambda p: p["out_b"]),
        stk(lambda p: p["ln1_w"]),                stk(lambda p: p["ln1_b"]),
        stk(lambda p: jnp.transpose(p["ff1_w"])), stk(lambda p: p["ff1_b"]),
        stk(lambda p: jnp.transpose(p["ff2_w"])), stk(lambda p: p["ff2_b"]),
        stk(lambda p: p["ln2_w"]),                stk(lambda p: p["ln2_b"]),
    )
    use_final_norm = norm_params is not None
    if use_final_norm:
        args = args + (norm_params["w"], norm_params["b"])
    else:  # unused dummies keep the kernel signature fixed (256 B, negligible)
        args = args + (jnp.ones((1, D), jnp.float32),
                       jnp.zeros((1, D), jnp.float32))

    out2d = pl.pallas_call(
        partial(fused_encoder_kernel, use_final_norm),
        out_shape=jax.ShapeDtypeStruct((S * B, D), jnp.float32),
        in_specs=[_vmem() for _ in args],
        out_specs=_vmem(),
    )(*args)
    # contiguous expansion back to (S, B, D) -- free, no transpose.
    return out2d.reshape(S, B, D)


# --------------------------- pure-numpy reference ----------------------------
def _ref_forward(src, layer_params, norm_params):
    x = np.asarray(src)                           # (S, B, D)
    S, B, D = x.shape
    H, Hd = NHEAD, D // NHEAD
    scale = 1.0 / math.sqrt(Hd)

    def ln(t, w, b):
        mu = t.mean(-1, keepdims=True)
        var = ((t - mu) ** 2).mean(-1, keepdims=True)
        return (t - mu) / np.sqrt(var + EPS) * np.asarray(w).reshape(-1) \
            + np.asarray(b).reshape(-1)

    for p in layer_params:
        qkv = x @ np.asarray(p["in_w"]).T + np.asarray(p["in_b"]).reshape(-1)
        attn = np.zeros_like(x)
        for b in range(B):
            for h in range(H):
                c0 = h * Hd
                q = qkv[:, b, c0:c0 + Hd] * scale
                k = qkv[:, b, D + c0:D + c0 + Hd]
                v = qkv[:, b, 2 * D + c0:2 * D + c0 + Hd]
                s = q @ k.T
                s = s - s.max(-1, keepdims=True)
                pr = np.exp(s)
                pr = pr / pr.sum(-1, keepdims=True)
                attn[:, b, c0:c0 + Hd] = pr @ v
        attn = attn @ np.asarray(p["out_w"]).T + np.asarray(p["out_b"]).reshape(-1)
        h1 = ln(x + attn, p["ln1_w"], p["ln1_b"])
        ff = np.maximum(h1 @ np.asarray(p["ff1_w"]).T
                        + np.asarray(p["ff1_b"]).reshape(-1), 0.0)
        ff = ff @ np.asarray(p["ff2_w"]).T + np.asarray(p["ff2_b"]).reshape(-1)
        x = ln(h1 + ff, p["ln2_w"], p["ln2_b"])
    if norm_params is not None:
        x = ln(x, norm_params["w"], norm_params["b"])
    return x


# ----------------------------- parameter init --------------------------------
def init_layer_params(key):
    ks = jax.random.split(key, 4)
    w = lambda k, shape: (0.02 * jax.random.normal(k, shape)).astype(jnp.float32)
    return {
        "in_w": w(ks[0], (3 * D_MODEL, D_MODEL)),
        "in_b": jnp.zeros((1, 3 * D_MODEL), jnp.float32),
        "out_w": w(ks[1], (D_MODEL, D_MODEL)),
        "out_b": jnp.zeros((1, D_MODEL), jnp.float32),
        "ln1_w": jnp.ones((1, D_MODEL), jnp.float32),
        "ln1_b": jnp.zeros((1, D_MODEL), jnp.float32),
        "ff1_w": w(ks[2], (DIM_FF, D_MODEL)),
        "ff1_b": jnp.zeros((1, DIM_FF), jnp.float32),
        "ff2_w": w(ks[3], (D_MODEL, DIM_FF)),
        "ff2_b": jnp.zeros((1, D_MODEL), jnp.float32),
        "ln2_w": jnp.ones((1, D_MODEL), jnp.float32),
        "ln2_b": jnp.zeros((1, D_MODEL), jnp.float32),
    }


# ---------------------------------- main --------------------------------------
if __name__ == "__main__":
    root = jax.random.PRNGKey(0)
    k_src, *k_layers = jax.random.split(root, NUM_LAYERS + 1)

    # different deterministic init per layer (the "DiffInit" part)
    layer_params = [init_layer_params(k) for k in k_layers]
    norm_params = {"w": jnp.ones((1, D_MODEL), jnp.float32),
                   "b": jnp.zeros((1, D_MODEL), jnp.float32)}

    src = jax.random.normal(k_src, (SEQ, BATCH, D_MODEL), dtype=jnp.float32)

    out = transformer_encoder_diff_init(src, layer_params, norm_params)
    out = jax.block_until_ready(out)

    ref = _ref_forward(src, layer_params, norm_params)
    np.testing.assert_allclose(np.asarray(out), ref, rtol=2e-3, atol=2e-3)

    print("KERNEL_OK")
</pallas_src>

<mosaic_0001>
module attributes {stable_mosaic.version = 11 : i64} {
  func.func @fused_encoder_kernel(%arg0: memref<16x32xf32, #tpu.memory_space<vmem>>, %arg1: memref<2x32x96xf32, #tpu.memory_space<vmem>>, %arg2: memref<2x1x96xf32, #tpu.memory_space<vmem>>, %arg3: memref<2x32x32xf32, #tpu.memory_space<vmem>>, %arg4: memref<2x1x32xf32, #tpu.memory_space<vmem>>, %arg5: memref<2x1x32xf32, #tpu.memory_space<vmem>>, %arg6: memref<2x1x32xf32, #tpu.memory_space<vmem>>, %arg7: memref<2x32x64xf32, #tpu.memory_space<vmem>>, %arg8: memref<2x1x64xf32, #tpu.memory_space<vmem>>, %arg9: memref<2x64x32xf32, #tpu.memory_space<vmem>>, %arg10: memref<2x1x32xf32, #tpu.memory_space<vmem>>, %arg11: memref<2x1x32xf32, #tpu.memory_space<vmem>>, %arg12: memref<2x1x32xf32, #tpu.memory_space<vmem>>, %arg13: memref<1x32xf32, #tpu.memory_space<vmem>>, %arg14: memref<1x32xf32, #tpu.memory_space<vmem>>, %arg15: memref<16x32xf32, #tpu.memory_space<vmem>>) attributes {dimension_semantics = [], scalar_prefetch = 0 : i64, scratch_operands = 0 : i64, tpu.core_type = #tpu.core_type<tc>} {
    %c0 = arith.constant 0 : index
    %c0_0 = arith.constant 0 : index
    %0 = vector.load %arg0[%c0, %c0_0] : memref<16x32xf32, #tpu.memory_space<vmem>>, vector<16x32xf32>
    %1 = tpu.iota {dimensions = array<i32: 0>} : vector<16x16xi32>
    %2 = tpu.iota {dimensions = array<i32: 1>} : vector<16x16xi32>
    %c2_i32 = arith.constant 2 : i32
    %c0_i32 = arith.constant 0 : i32
    %3 = arith.cmpi eq, %c2_i32, %c0_i32 : i32
    %c1_i32 = arith.constant 1 : i32
    %4 = arith.select %3, %c1_i32, %c2_i32 : i32
    %5 = vector.broadcast %4 : i32 to vector<16x16xi32>
    %6 = arith.remsi %1, %5 : vector<16x16xi32>
    %c0_i32_1 = arith.constant 0 : i32
    %7 = vector.broadcast %c0_i32_1 : i32 to vector<16x16xi32>
    %8 = arith.cmpi ne, %6, %7 : vector<16x16xi32>
    %c0_i32_2 = arith.constant 0 : i32
    %9 = vector.broadcast %c0_i32_2 : i32 to vector<16x16xi32>
    %10 = arith.cmpi slt, %6, %9 : vector<16x16xi32>
    %c0_i32_3 = arith.constant 0 : i32
    %11 = arith.cmpi slt, %4, %c0_i32_3 : i32
    %12 = vector.broadcast %11 : i1 to vector<16x16xi1>
    %13 = vector.broadcast %12 : vector<16x16xi1> to vector<16x16xi1>
    %14 = arith.xori %10, %13 : vector<16x16xi1>
    %15 = arith.andi %14, %8 : vector<16x16xi1>
    %16 = vector.broadcast %4 : i32 to vector<16x16xi32>
    %17 = arith.addi %6, %16 : vector<16x16xi32>
    %18 = arith.select %15, %17, %6 : vector<16x16xi1>, vector<16x16xi32>
    %c2_i32_4 = arith.constant 2 : i32
    %c0_i32_5 = arith.constant 0 : i32
    %19 = arith.cmpi eq, %c2_i32_4, %c0_i32_5 : i32
    %c1_i32_6 = arith.constant 1 : i32
    %20 = arith.select %19, %c1_i32_6, %c2_i32_4 : i32
    %21 = vector.broadcast %20 : i32 to vector<16x16xi32>
    %22 = arith.remsi %2, %21 : vector<16x16xi32>
    %c0_i32_7 = arith.constant 0 : i32
    %23 = vector.broadcast %c0_i32_7 : i32 to vector<16x16xi32>
    %24 = arith.cmpi ne, %22, %23 : vector<16x16xi32>
    %c0_i32_8 = arith.constant 0 : i32
    %25 = vector.broadcast %c0_i32_8 : i32 to vector<16x16xi32>
    %26 = arith.cmpi slt, %22, %25 : vector<16x16xi32>
    %c0_i32_9 = arith.constant 0 : i32
    %27 = arith.cmpi slt, %20, %c0_i32_9 : i32
    %28 = vector.broadcast %27 : i1 to vector<16x16xi1>
    %29 = vector.broadcast %28 : vector<16x16xi1> to vector<16x16xi1>
    %30 = arith.xori %26, %29 : vector<16x16xi1>
    %31 = arith.andi %30, %24 : vector<16x16xi1>
    %32 = vector.broadcast %20 : i32 to vector<16x16xi32>
    %33 = arith.addi %22, %32 : vector<16x16xi32>
    %34 = arith.select %31, %33, %22 : vector<16x16xi1>, vector<16x16xi32>
    %35 = arith.cmpi eq, %18, %34 : vector<16x16xi32>
    %c0_10 = arith.constant 0 : index
    %c0_11 = arith.constant 0 : index
    %c0_12 = arith.constant 0 : index
    %36 = vector.load %arg1[%c0_10, %c0_11, %c0_12] : memref<2x32x96xf32, #tpu.memory_space<vmem>>, vector<1x32x96xf32>
    %37 = vector.shape_cast %36 : vector<1x32x96xf32> to vector<32x96xf32>
    %c0_13 = arith.constant 0 : index
    %c0_14 = arith.constant 0 : index
    %c0_15 = arith.constant 0 : index
    %38 = vector.load %arg2[%c0_13, %c0_14, %c0_15] : memref<2x1x96xf32, #tpu.memory_space<vmem>>, vector<1x1x96xf32>
    %39 = vector.shape_cast %38 : vector<1x1x96xf32> to vector<1x96xf32>
    %c0_16 = arith.constant 0 : index
    %c0_17 = arith.constant 0 : index
    %c0_18 = arith.constant 0 : index
    %40 = vector.load %arg3[%c0_16, %c0_17, %c0_18] : memref<2x32x32xf32, #tpu.memory_space<vmem>>, vector<1x32x32xf32>
    %41 = vector.shape_cast %40 : vector<1x32x32xf32> to vector<32x32xf32>
    %c0_19 = arith.constant 0 : index
    %c0_20 = arith.constant 0 : index
    %c0_21 = arith.constant 0 : index
    %42 = vector.load %arg4[%c0_19, %c0_20, %c0_21] : memref<2x1x32xf32, #tpu.memory_space<vmem>>, vector<1x1x32xf32>
    %43 = vector.shape_cast %42 : vector<1x1x32xf32> to vector<1x32xf32>
    %c0_22 = arith.constant 0 : index
    %c0_23 = arith.constant 0 : index
    %c0_24 = arith.constant 0 : index
    %44 = vector.load %arg5[%c0_22, %c0_23, %c0_24] : memref<2x1x32xf32, #tpu.memory_space<vmem>>, vector<1x1x32xf32>
    %45 = vector.shape_cast %44 : vector<1x1x32xf32> to vector<1x32xf32>
    %c0_25 = arith.constant 0 : index
    %c0_26 = arith.constant 0 : index
    %c0_27 = arith.constant 0 : index
    %46 = vector.load %arg6[%c0_25, %c0_26, %c0_27] : memref<2x1x32xf32, #tpu.memory_space<vmem>>, vector<1x1x32xf32>
    %47 = vector.shape_cast %46 : vector<1x1x32xf32> to vector<1x32xf32>
    %c0_28 = arith.constant 0 : index
    %c0_29 = arith.constant 0 : index
    %c0_30 = arith.constant 0 : index
    %48 = vector.load %arg7[%c0_28, %c0_29, %c0_30] : memref<2x32x64xf32, #tpu.memory_space<vmem>>, vector<1x32x64xf32>
    %49 = vector.shape_cast %48 : vector<1x32x64xf32> to vector<32x64xf32>
    %c0_31 = arith.constant 0 : index
    %c0_32 = arith.constant 0 : index
    %c0_33 = arith.constant 0 : index
    %50 = vector.load %arg8[%c0_31, %c0_32, %c0_33] : memref<2x1x64xf32, #tpu.memory_space<vmem>>, vector<1x1x64xf32>
    %51 = vector.shape_cast %50 : vector<1x1x64xf32> to vector<1x64xf32>
    %c0_34 = arith.constant 0 : index
    %c0_35 = arith.constant 0 : index
    %c0_36 = arith.constant 0 : index
    %52 = vector.load %arg9[%c0_34, %c0_35, %c0_36] : memref<2x64x32xf32, #tpu.memory_space<vmem>>, vector<1x64x32xf32>
    %53 = vector.shape_cast %52 : vector<1x64x32xf32> to vector<64x32xf32>
    %c0_37 = arith.constant 0 : index
    %c0_38 = arith.constant 0 : index
    %c0_39 = arith.constant 0 : index
    %54 = vector.load %arg10[%c0_37, %c0_38, %c0_39] : memref<2x1x32xf32, #tpu.memory_space<vmem>>, vector<1x1x32xf32>
    %55 = vector.shape_cast %54 : vector<1x1x32xf32> to vector<1x32xf32>
    %c0_40 = arith.constant 0 : index
    %c0_41 = arith.constant 0 : index
    %c0_42 = arith.constant 0 : index
    %56 = vector.load %arg11[%c0_40, %c0_41, %c0_42] : memref<2x1x32xf32, #tpu.memory_space<vmem>>, vector<1x1x32xf32>
    %57 = vector.shape_cast %56 : vector<1x1x32xf32> to vector<1x32xf32>
    %c0_43 = arith.constant 0 : index
    %c0_44 = arith.constant 0 : index
    %c0_45 = arith.constant 0 : index
    %58 = vector.load %arg12[%c0_43, %c0_44, %c0_45] : memref<2x1x32xf32, #tpu.memory_space<vmem>>, vector<1x1x32xf32>
    %59 = vector.shape_cast %58 : vector<1x1x32xf32> to vector<1x32xf32>
    %cst = arith.constant dense<0.000000e+00> : vector<16x96xf32>
    %60 = tpu.matmul %0, %37, %cst {dimension_numbers = #tpu.dot_dimension_numbers<[1], [0], [0], [1], [0, 0, 1, 1], [], []>} : vector<16x32xf32>, vector<32x96xf32>, vector<16x96xf32> -> vector<16x96xf32>
    %61 = vector.broadcast %39 : vector<1x96xf32> to vector<16x96xf32>
    %62 = arith.addf %60, %61 : vector<16x96xf32>
    %63 = vector.extract_strided_slice %62 {offsets = [0, 0], sizes = [16, 16], strides = [1, 1]} : vector<16x96xf32> to vector<16x16xf32>
    %64 = vector.extract_strided_slice %62 {offsets = [0, 32], sizes = [16, 16], strides = [1, 1]} : vector<16x96xf32> to vector<16x16xf32>
    %65 = vector.extract_strided_slice %62 {offsets = [0, 64], sizes = [16, 16], strides = [1, 1]} : vector<16x96xf32> to vector<16x16xf32>
    "tpu.trace_start"() <{level = 10 : i32, message = "qc,kc->qk"}> : () -> ()
    %cst_46 = arith.constant dense<0.000000e+00> : vector<16x16xf32>
    %66 = tpu.matmul %63, %64, %cst_46 {dimension_numbers = #tpu.dot_dimension_numbers<[1], [1], [0], [0], [0, 0, 1, 0], [], []>} : vector<16x16xf32>, vector<16x16xf32>, vector<16x16xf32> -> vector<16x16xf32>
    %cst_47 = arith.constant -1.000000e+30 : f32
    "tpu.trace_stop"() : () -> ()
    %67 = vector.broadcast %cst_47 : f32 to vector<16x16xf32>
    %68 = arith.select %35, %66, %67 : vector<16x16xi1>, vector<16x16xf32>
    %cst_48 = arith.constant dense<0xFF800000> : vector<16xf32>
    %69 = vector.multi_reduction <maximumf>, %68, %cst_48 [1] : vector<16x16xf32> to vector<16xf32>
    %70 = vector.shape_cast %69 : vector<16xf32> to vector<16x1xf32>
    %71 = vector.broadcast %70 : vector<16x1xf32> to vector<16x16xf32>
    %72 = arith.subf %68, %71 : vector<16x16xf32>
    %73 = math.exp %72 : vector<16x16xf32>
    %cst_49 = arith.constant dense<0.000000e+00> : vector<16xf32>
    %74 = vector.multi_reduction <add>, %73, %cst_49 [1] : vector<16x16xf32> to vector<16xf32>
    %75 = vector.shape_cast %74 : vector<16xf32> to vector<16x1xf32>
    %76 = tpu.reciprocal %75 {approx = true} : vector<16x1xf32> -> vector<16x1xf32>
    %77 = vector.broadcast %76 : vector<16x1xf32> to vector<16x16xf32>
    %78 = arith.mulf %73, %77 : vector<16x16xf32>
    %cst_50 = arith.constant dense<0.000000e+00> : vector<16x16xf32>
    %79 = tpu.matmul %78, %65, %cst_50 {dimension_numbers = #tpu.dot_dimension_numbers<[1], [0], [0], [1], [0, 0, 1, 1], [], []>} : vector<16x16xf32>, vector<16x16xf32>, vector<16x16xf32> -> vector<16x16xf32>
    %80 = vector.extract_strided_slice %62 {offsets = [0, 16], sizes = [16, 16], strides = [1, 1]} : vector<16x96xf32> to vector<16x16xf32>
    %81 = vector.extract_strided_slice %62 {offsets = [0, 48], sizes = [16, 16], strides = [1, 1]} : vector<16x96xf32> to vector<16x16xf32>
    %82 = vector.extract_strided_slice %62 {offsets = [0, 80], sizes = [16, 16], strides = [1, 1]} : vector<16x96xf32> to vector<16x16xf32>
    "tpu.trace_start"() <{level = 10 : i32, message = "qc,kc->qk"}> : () -> ()
    %cst_51 = arith.constant dense<0.000000e+00> : vector<16x16xf32>
    %83 = tpu.matmul %80, %81, %cst_51 {dimension_numbers = #tpu.dot_dimension_numbers<[1], [1], [0], [0], [0, 0, 1, 0], [], []>} : vector<16x16xf32>, vector<16x16xf32>, vector<16x16xf32> -> vector<16x16xf32>
    %cst_52 = arith.constant -1.000000e+30 : f32
    "tpu.trace_stop"() : () -> ()
    %84 = vector.broadcast %cst_52 : f32 to vector<16x16xf32>
    %85 = arith.select %35, %83, %84 : vector<16x16xi1>, vector<16x16xf32>
    %cst_53 = arith.constant dense<0xFF800000> : vector<16xf32>
    %86 = vector.multi_reduction <maximumf>, %85, %cst_53 [1] : vector<16x16xf32> to vector<16xf32>
    %87 = vector.shape_cast %86 : vector<16xf32> to vector<16x1xf32>
    %88 = vector.broadcast %87 : vector<16x1xf32> to vector<16x16xf32>
    %89 = arith.subf %85, %88 : vector<16x16xf32>
    %90 = math.exp %89 : vector<16x16xf32>
    %cst_54 = arith.constant dense<0.000000e+00> : vector<16xf32>
    %91 = vector.multi_reduction <add>, %90, %cst_54 [1] : vector<16x16xf32> to vector<16xf32>
    %92 = vector.shape_cast %91 : vector<16xf32> to vector<16x1xf32>
    %93 = tpu.reciprocal %92 {approx = true} : vector<16x1xf32> -> vector<16x1xf32>
    %94 = vector.broadcast %93 : vector<16x1xf32> to vector<16x16xf32>
    %95 = arith.mulf %90, %94 : vector<16x16xf32>
    %cst_55 = arith.constant dense<0.000000e+00> : vector<16x16xf32>
    %96 = tpu.matmul %95, %82, %cst_55 {dimension_numbers = #tpu.dot_dimension_numbers<[1], [0], [0], [1], [0, 0, 1, 1], [], []>} : vector<16x16xf32>, vector<16x16xf32>, vector<16x16xf32> -> vector<16x16xf32>
    %97 = tpu.concatenate %79, %96 in 1 : vector<16x16xf32>, vector<16x16xf32> -> vector<16x32xf32>
    %cst_56 = arith.constant dense<0.000000e+00> : vector<16x32xf32>
    %98 = tpu.matmul %97, %41, %cst_56 {dimension_numbers = #tpu.dot_dimension_numbers<[1], [0], [0], [1], [0, 0, 1, 1], [], []>} : vector<16x32xf32>, vector<32x32xf32>, vector<16x32xf32> -> vector<16x32xf32>
    %99 = vector.broadcast %43 : vector<1x32xf32> to vector<16x32xf32>
    %100 = arith.addf %98, %99 : vector<16x32xf32>
    %101 = arith.addf %0, %100 : vector<16x32xf32>
    %cst_57 = arith.constant dense<0.000000e+00> : vector<16xf32>
    %102 = vector.multi_reduction <add>, %101, %cst_57 [1] : vector<16x32xf32> to vector<16xf32>
    %103 = vector.shape_cast %102 : vector<16xf32> to vector<16x1xf32>
    %cst_58 = arith.constant 3.200000e+01 : f32
    %104 = vector.broadcast %cst_58 : f32 to vector<16x1xf32>
    %105 = arith.divf %103, %104 : vector<16x1xf32>
    %106 = vector.broadcast %105 : vector<16x1xf32> to vector<16x32xf32>
    %107 = arith.subf %101, %106 : vector<16x32xf32>
    %108 = arith.mulf %107, %107 : vector<16x32xf32>
    %cst_59 = arith.constant dense<0.000000e+00> : vector<16xf32>
    %109 = vector.multi_reduction <add>, %108, %cst_59 [1] : vector<16x32xf32> to vector<16xf32>
    %110 = vector.shape_cast %109 : vector<16xf32> to vector<16x1xf32>
    %cst_60 = arith.constant 3.200000e+01 : f32
    %111 = vector.broadcast %cst_60 : f32 to vector<16x1xf32>
    %112 = arith.divf %110, %111 : vector<16x1xf32>
    %113 = vector.broadcast %105 : vector<16x1xf32> to vector<16x32xf32>
    %114 = arith.subf %101, %113 : vector<16x32xf32>
    %cst_61 = arith.constant 9.99999974E-6 : f32
    %115 = vector.broadcast %cst_61 : f32 to vector<16x1xf32>
    %116 = arith.addf %112, %115 : vector<16x1xf32>
    %117 = math.rsqrt %116 : vector<16x1xf32>
    %118 = vector.broadcast %117 : vector<16x1xf32> to vector<16x32xf32>
    %119 = arith.mulf %114, %118 : vector<16x32xf32>
    %120 = vector.broadcast %45 : vector<1x32xf32> to vector<16x32xf32>
    %121 = arith.mulf %119, %120 : vector<16x32xf32>
    %122 = vector.broadcast %47 : vector<1x32xf32> to vector<16x32xf32>
    %123 = arith.addf %121, %122 : vector<16x32xf32>
    %cst_62 = arith.constant dense<0.000000e+00> : vector<16x64xf32>
    %124 = tpu.matmul %123, %49, %cst_62 {dimension_numbers = #tpu.dot_dimension_numbers<[1], [0], [0], [1], [0, 0, 1, 1], [], []>} : vector<16x32xf32>, vector<32x64xf32>, vector<16x64xf32> -> vector<16x64xf32>
    %125 = vector.broadcast %51 : vector<1x64xf32> to vector<16x64xf32>
    %126 = arith.addf %124, %125 : vector<16x64xf32>
    %cst_63 = arith.constant 0.000000e+00 : f32
    %127 = vector.broadcast %cst_63 : f32 to vector<16x64xf32>
    %128 = arith.maximumf %126, %127 : vector<16x64xf32>
    %cst_64 = arith.constant dense<0.000000e+00> : vector<16x32xf32>
    %129 = tpu.matmul %128, %53, %cst_64 {dimension_numbers = #tpu.dot_dimension_numbers<[1], [0], [0], [1], [0, 0, 1, 1], [], []>} : vector<16x64xf32>, vector<64x32xf32>, vector<16x32xf32> -> vector<16x32xf32>
    %130 = vector.broadcast %55 : vector<1x32xf32> to vector<16x32xf32>
    %131 = arith.addf %129, %130 : vector<16x32xf32>
    %132 = arith.addf %123, %131 : vector<16x32xf32>
    %cst_65 = arith.constant dense<0.000000e+00> : vector<16xf32>
    %133 = vector.multi_reduction <add>, %132, %cst_65 [1] : vector<16x32xf32> to vector<16xf32>
    %134 = vector.shape_cast %133 : vector<16xf32> to vector<16x1xf32>
    %cst_66 = arith.constant 3.200000e+01 : f32
    %135 = vector.broadcast %cst_66 : f32 to vector<16x1xf32>
    %136 = arith.divf %134, %135 : vector<16x1xf32>
    %137 = vector.broadcast %136 : vector<16x1xf32> to vector<16x32xf32>
    %138 = arith.subf %132, %137 : vector<16x32xf32>
    %139 = arith.mulf %138, %138 : vector<16x32xf32>
    %cst_67 = arith.constant dense<0.000000e+00> : vector<16xf32>
    %140 = vector.multi_reduction <add>, %139, %cst_67 [1] : vector<16x32xf32> to vector<16xf32>
    %141 = vector.shape_cast %140 : vector<16xf32> to vector<16x1xf32>
    %cst_68 = arith.constant 3.200000e+01 : f32
    %142 = vector.broadcast %cst_68 : f32 to vector<16x1xf32>
    %143 = arith.divf %141, %142 : vector<16x1xf32>
    %144 = vector.broadcast %136 : vector<16x1xf32> to vector<16x32xf32>
    %145 = arith.subf %132, %144 : vector<16x32xf32>
    %cst_69 = arith.constant 9.99999974E-6 : f32
    %146 = vector.broadcast %cst_69 : f32 to vector<16x1xf32>
    %147 = arith.addf %143, %146 : vector<16x1xf32>
    %148 = math.rsqrt %147 : vector<16x1xf32>
    %149 = vector.broadcast %148 : vector<16x1xf32> to vector<16x32xf32>
    %150 = arith.mulf %145, %149 : vector<16x32xf32>
    %151 = vector.broadcast %57 : vector<1x32xf32> to vector<16x32xf32>
    %152 = arith.mulf %150, %151 : vector<16x32xf32>
    %153 = vector.broadcast %59 : vector<1x32xf32> to vector<16x32xf32>
    %154 = arith.addf %152, %153 : vector<16x32xf32>
    %c1 = arith.constant 1 : index
    %c0_70 = arith.constant 0 : index
    %c0_71 = arith.constant 0 : index
    %155 = vector.load %arg1[%c1, %c0_70, %c0_71] : memref<2x32x96xf32, #tpu.memory_space<vmem>>, vector<1x32x96xf32>
    %156 = vector.shape_cast %155 : vector<1x32x96xf32> to vector<32x96xf32>
    %c1_72 = arith.constant 1 : index
    %c0_73 = arith.constant 0 : index
    %c0_74 = arith.constant 0 : index
    %157 = vector.load %arg2[%c1_72, %c0_73, %c0_74] : memref<2x1x96xf32, #tpu.memory_space<vmem>>, vector<1x1x96xf32>
    %158 = vector.shape_cast %157 : vector<1x1x96xf32> to vector<1x96xf32>
    %c1_75 = arith.constant 1 : index
    %c0_76 = arith.constant 0 : index
    %c0_77 = arith.constant 0 : index
    %159 = vector.load %arg3[%c1_75, %c0_76, %c0_77] : memref<2x32x32xf32, #tpu.memory_space<vmem>>, vector<1x32x32xf32>
    %160 = vector.shape_cast %159 : vector<1x32x32xf32> to vector<32x32xf32>
    %c1_78 = arith.constant 1 : index
    %c0_79 = arith.constant 0 : index
    %c0_80 = arith.constant 0 : index
    %161 = vector.load %arg4[%c1_78, %c0_79, %c0_80] : memref<2x1x32xf32, #tpu.memory_space<vmem>>, vector<1x1x32xf32>
    %162 = vector.shape_cast %161 : vector<1x1x32xf32> to vector<1x32xf32>
    %c1_81 = arith.constant 1 : index
    %c0_82 = arith.constant 0 : index
    %c0_83 = arith.constant 0 : index
    %163 = vector.load %arg5[%c1_81, %c0_82, %c0_83] : memref<2x1x32xf32, #tpu.memory_space<vmem>>, vector<1x1x32xf32>
    %164 = vector.shape_cast %163 : vector<1x1x32xf32> to vector<1x32xf32>
    %c1_84 = arith.constant 1 : index
    %c0_85 = arith.constant 0 : index
    %c0_86 = arith.constant 0 : index
    %165 = vector.load %arg6[%c1_84, %c0_85, %c0_86] : memref<2x1x32xf32, #tpu.memory_space<vmem>>, vector<1x1x32xf32>
    %166 = vector.shape_cast %165 : vector<1x1x32xf32> to vector<1x32xf32>
    %c1_87 = arith.constant 1 : index
    %c0_88 = arith.constant 0 : index
    %c0_89 = arith.constant 0 : index
    %167 = vector.load %arg7[%c1_87, %c0_88, %c0_89] : memref<2x32x64xf32, #tpu.memory_space<vmem>>, vector<1x32x64xf32>
    %168 = vector.shape_cast %167 : vector<1x32x64xf32> to vector<32x64xf32>
    %c1_90 = arith.constant 1 : index
    %c0_91 = arith.constant 0 : index
    %c0_92 = arith.constant 0 : index
    %169 = vector.load %arg8[%c1_90, %c0_91, %c0_92] : memref<2x1x64xf32, #tpu.memory_space<vmem>>, vector<1x1x64xf32>
    %170 = vector.shape_cast %169 : vector<1x1x64xf32> to vector<1x64xf32>
    %c1_93 = arith.constant 1 : index
    %c0_94 = arith.constant 0 : index
    %c0_95 = arith.constant 0 : index
    %171 = vector.load %arg9[%c1_93, %c0_94, %c0_95] : memref<2x64x32xf32, #tpu.memory_space<vmem>>, vector<1x64x32xf32>
    %172 = vector.shape_cast %171 : vector<1x64x32xf32> to vector<64x32xf32>
    %c1_96 = arith.constant 1 : index
    %c0_97 = arith.constant 0 : index
    %c0_98 = arith.constant 0 : index
    %173 = vector.load %arg10[%c1_96, %c0_97, %c0_98] : memref<2x1x32xf32, #tpu.memory_space<vmem>>, vector<1x1x32xf32>
    %174 = vector.shape_cast %173 : vector<1x1x32xf32> to vector<1x32xf32>
    %c1_99 = arith.constant 1 : index
    %c0_100 = arith.constant 0 : index
    %c0_101 = arith.constant 0 : index
    %175 = vector.load %arg11[%c1_99, %c0_100, %c0_101] : memref<2x1x32xf32, #tpu.memory_space<vmem>>, vector<1x1x32xf32>
    %176 = vector.shape_cast %175 : vector<1x1x32xf32> to vector<1x32xf32>
    %c1_102 = arith.constant 1 : index
    %c0_103 = arith.constant 0 : index
    %c0_104 = arith.constant 0 : index
    %177 = vector.load %arg12[%c1_102, %c0_103, %c0_104] : memref<2x1x32xf32, #tpu.memory_space<vmem>>, vector<1x1x32xf32>
    %178 = vector.shape_cast %177 : vector<1x1x32xf32> to vector<1x32xf32>
    %cst_105 = arith.constant dense<0.000000e+00> : vector<16x96xf32>
    %179 = tpu.matmul %154, %156, %cst_105 {dimension_numbers = #tpu.dot_dimension_numbers<[1], [0], [0], [1], [0, 0, 1, 1], [], []>} : vector<16x32xf32>, vector<32x96xf32>, vector<16x96xf32> -> vector<16x96xf32>
    %180 = vector.broadcast %158 : vector<1x96xf32> to vector<16x96xf32>
    %181 = arith.addf %179, %180 : vector<16x96xf32>
    %182 = vector.extract_strided_slice %181 {offsets = [0, 0], sizes = [16, 16], strides = [1, 1]} : vector<16x96xf32> to vector<16x16xf32>
    %183 = vector.extract_strided_slice %181 {offsets = [0, 32], sizes = [16, 16], strides = [1, 1]} : vector<16x96xf32> to vector<16x16xf32>
    %184 = vector.extract_strided_slice %181 {offsets = [0, 64], sizes = [16, 16], strides = [1, 1]} : vector<16x96xf32> to vector<16x16xf32>
    "tpu.trace_start"() <{level = 10 : i32, message = "qc,kc->qk"}> : () -> ()
    %cst_106 = arith.constant dense<0.000000e+00> : vector<16x16xf32>
    %185 = tpu.matmul %182, %183, %cst_106 {dimension_numbers = #tpu.dot_dimension_numbers<[1], [1], [0], [0], [0, 0, 1, 0], [], []>} : vector<16x16xf32>, vector<16x16xf32>, vector<16x16xf32> -> vector<16x16xf32>
    %cst_107 = arith.constant -1.000000e+30 : f32
    "tpu.trace_stop"() : () -> ()
    %186 = vector.broadcast %cst_107 : f32 to vector<16x16xf32>
    %187 = arith.select %35, %185, %186 : vector<16x16xi1>, vector<16x16xf32>
    %cst_108 = arith.constant dense<0xFF800000> : vector<16xf32>
    %188 = vector.multi_reduction <maximumf>, %187, %cst_108 [1] : vector<16x16xf32> to vector<16xf32>
    %189 = vector.shape_cast %188 : vector<16xf32> to vector<16x1xf32>
    %190 = vector.broadcast %189 : vector<16x1xf32> to vector<16x16xf32>
    %191 = arith.subf %187, %190 : vector<16x16xf32>
    %192 = math.exp %191 : vector<16x16xf32>
    %cst_109 = arith.constant dense<0.000000e+00> : vector<16xf32>
    %193 = vector.multi_reduction <add>, %192, %cst_109 [1] : vector<16x16xf32> to vector<16xf32>
    %194 = vector.shape_cast %193 : vector<16xf32> to vector<16x1xf32>
    %195 = tpu.reciprocal %194 {approx = true} : vector<16x1xf32> -> vector<16x1xf32>
    %196 = vector.broadcast %195 : vector<16x1xf32> to vector<16x16xf32>
    %197 = arith.mulf %192, %196 : vector<16x16xf32>
    %cst_110 = arith.constant dense<0.000000e+00> : vector<16x16xf32>
    %198 = tpu.matmul %197, %184, %cst_110 {dimension_numbers = #tpu.dot_dimension_numbers<[1], [0], [0], [1], [0, 0, 1, 1], [], []>} : vector<16x16xf32>, vector<16x16xf32>, vector<16x16xf32> -> vector<16x16xf32>
    %199 = vector.extract_strided_slice %181 {offsets = [0, 16], sizes = [16, 16], strides = [1, 1]} : vector<16x96xf32> to vector<16x16xf32>
    %200 = vector.extract_strided_slice %181 {offsets = [0, 48], sizes = [16, 16], strides = [1, 1]} : vector<16x96xf32> to vector<16x16xf32>
    %201 = vector.extract_strided_slice %181 {offsets = [0, 80], sizes = [16, 16], strides = [1, 1]} : vector<16x96xf32> to vector<16x16xf32>
    "tpu.trace_start"() <{level = 10 : i32, message = "qc,kc->qk"}> : () -> ()
    %cst_111 = arith.constant dense<0.000000e+00> : vector<16x16xf32>
    %202 = tpu.matmul %199, %200, %cst_111 {dimension_numbers = #tpu.dot_dimension_numbers<[1], [1], [0], [0], [0, 0, 1, 0], [], []>} : vector<16x16xf32>, vector<16x16xf32>, vector<16x16xf32> -> vector<16x16xf32>
    %cst_112 = arith.constant -1.000000e+30 : f32
    "tpu.trace_stop"() : () -> ()
    %203 = vector.broadcast %cst_112 : f32 to vector<16x16xf32>
    %204 = arith.select %35, %202, %203 : vector<16x16xi1>, vector<16x16xf32>
    %cst_113 = arith.constant dense<0xFF800000> : vector<16xf32>
    %205 = vector.multi_reduction <maximumf>, %204, %cst_113 [1] : vector<16x16xf32> to vector<16xf32>
    %206 = vector.shape_cast %205 : vector<16xf32> to vector<16x1xf32>
    %207 = vector.broadcast %206 : vector<16x1xf32> to vector<16x16xf32>
    %208 = arith.subf %204, %207 : vector<16x16xf32>
    %209 = math.exp %208 : vector<16x16xf32>
    %cst_114 = arith.constant dense<0.000000e+00> : vector<16xf32>
    %210 = vector.multi_reduction <add>, %209, %cst_114 [1] : vector<16x16xf32> to vector<16xf32>
    %211 = vector.shape_cast %210 : vector<16xf32> to vector<16x1xf32>
    %212 = tpu.reciprocal %211 {approx = true} : vector<16x1xf32> -> vector<16x1xf32>
    %213 = vector.broadcast %212 : vector<16x1xf32> to vector<16x16xf32>
    %214 = arith.mulf %209, %213 : vector<16x16xf32>
    %cst_115 = arith.constant dense<0.000000e+00> : vector<16x16xf32>
    %215 = tpu.matmul %214, %201, %cst_115 {dimension_numbers = #tpu.dot_dimension_numbers<[1], [0], [0], [1], [0, 0, 1, 1], [], []>} : vector<16x16xf32>, vector<16x16xf32>, vector<16x16xf32> -> vector<16x16xf32>
    %216 = tpu.concatenate %198, %215 in 1 : vector<16x16xf32>, vector<16x16xf32> -> vector<16x32xf32>
    %cst_116 = arith.constant dense<0.000000e+00> : vector<16x32xf32>
    %217 = tpu.matmul %216, %160, %cst_116 {dimension_numbers = #tpu.dot_dimension_numbers<[1], [0], [0], [1], [0, 0, 1, 1], [], []>} : vector<16x32xf32>, vector<32x32xf32>, vector<16x32xf32> -> vector<16x32xf32>
    %218 = vector.broadcast %162 : vector<1x32xf32> to vector<16x32xf32>
    %219 = arith.addf %217, %218 : vector<16x32xf32>
    %220 = arith.addf %154, %219 : vector<16x32xf32>
    %cst_117 = arith.constant dense<0.000000e+00> : vector<16xf32>
    %221 = vector.multi_reduction <add>, %220, %cst_117 [1] : vector<16x32xf32> to vector<16xf32>
    %222 = vector.shape_cast %221 : vector<16xf32> to vector<16x1xf32>
    %cst_118 = arith.constant 3.200000e+01 : f32
    %223 = vector.broadcast %cst_118 : f32 to vector<16x1xf32>
    %224 = arith.divf %222, %223 : vector<16x1xf32>
    %225 = vector.broadcast %224 : vector<16x1xf32> to vector<16x32xf32>
    %226 = arith.subf %220, %225 : vector<16x32xf32>
    %227 = arith.mulf %226, %226 : vector<16x32xf32>
    %cst_119 = arith.constant dense<0.000000e+00> : vector<16xf32>
    %228 = vector.multi_reduction <add>, %227, %cst_119 [1] : vector<16x32xf32> to vector<16xf32>
    %229 = vector.shape_cast %228 : vector<16xf32> to vector<16x1xf32>
    %cst_120 = arith.constant 3.200000e+01 : f32
    %230 = vector.broadcast %cst_120 : f32 to vector<16x1xf32>
    %231 = arith.divf %229, %230 : vector<16x1xf32>
    %232 = vector.broadcast %224 : vector<16x1xf32> to vector<16x32xf32>
    %233 = arith.subf %220, %232 : vector<16x32xf32>
    %cst_121 = arith.constant 9.99999974E-6 : f32
    %234 = vector.broadcast %cst_121 : f32 to vector<16x1xf32>
    %235 = arith.addf %231, %234 : vector<16x1xf32>
    %236 = math.rsqrt %235 : vector<16x1xf32>
    %237 = vector.broadcast %236 : vector<16x1xf32> to vector<16x32xf32>
    %238 = arith.mulf %233, %237 : vector<16x32xf32>
    %239 = vector.broadcast %164 : vector<1x32xf32> to vector<16x32xf32>
    %240 = arith.mulf %238, %239 : vector<16x32xf32>
    %241 = vector.broadcast %166 : vector<1x32xf32> to vector<16x32xf32>
    %242 = arith.addf %240, %241 : vector<16x32xf32>
    %cst_122 = arith.constant dense<0.000000e+00> : vector<16x64xf32>
    %243 = tpu.matmul %242, %168, %cst_122 {dimension_numbers = #tpu.dot_dimension_numbers<[1], [0], [0], [1], [0, 0, 1, 1], [], []>} : vector<16x32xf32>, vector<32x64xf32>, vector<16x64xf32> -> vector<16x64xf32>
    %244 = vector.broadcast %170 : vector<1x64xf32> to vector<16x64xf32>
    %245 = arith.addf %243, %244 : vector<16x64xf32>
    %cst_123 = arith.constant 0.000000e+00 : f32
    %246 = vector.broadcast %cst_123 : f32 to vector<16x64xf32>
    %247 = arith.maximumf %245, %246 : vector<16x64xf32>
    %cst_124 = arith.constant dense<0.000000e+00> : vector<16x32xf32>
    %248 = tpu.matmul %247, %172, %cst_124 {dimension_numbers = #tpu.dot_dimension_numbers<[1], [0], [0], [1], [0, 0, 1, 1], [], []>} : vector<16x64xf32>, vector<64x32xf32>, vector<16x32xf32> -> vector<16x32xf32>
    %249 = vector.broadcast %174 : vector<1x32xf32> to vector<16x32xf32>
    %250 = arith.addf %248, %249 : vector<16x32xf32>
    %251 = arith.addf %242, %250 : vector<16x32xf32>
    %cst_125 = arith.constant dense<0.000000e+00> : vector<16xf32>
    %252 = vector.multi_reduction <add>, %251, %cst_125 [1] : vector<16x32xf32> to vector<16xf32>
    %253 = vector.shape_cast %252 : vector<16xf32> to vector<16x1xf32>
    %cst_126 = arith.constant 3.200000e+01 : f32
    %254 = vector.broadcast %cst_126 : f32 to vector<16x1xf32>
    %255 = arith.divf %253, %254 : vector<16x1xf32>
    %256 = vector.broadcast %255 : vector<16x1xf32> to vector<16x32xf32>
    %257 = arith.subf %251, %256 : vector<16x32xf32>
    %258 = arith.mulf %257, %257 : vector<16x32xf32>
    %cst_127 = arith.constant dense<0.000000e+00> : vector<16xf32>
    %259 = vector.multi_reduction <add>, %258, %cst_127 [1] : vector<16x32xf32> to vector<16xf32>
    %260 = vector.shape_cast %259 : vector<16xf32> to vector<16x1xf32>
    %cst_128 = arith.constant 3.200000e+01 : f32
    %261 = vector.broadcast %cst_128 : f32 to vector<16x1xf32>
    %262 = arith.divf %260, %261 : vector<16x1xf32>
    %263 = vector.broadcast %255 : vector<16x1xf32> to vector<16x32xf32>
    %264 = arith.subf %251, %263 : vector<16x32xf32>
    %cst_129 = arith.constant 9.99999974E-6 : f32
    %265 = vector.broadcast %cst_129 : f32 to vector<16x1xf32>
    %266 = arith.addf %262, %265 : vector<16x1xf32>
    %267 = math.rsqrt %266 : vector<16x1xf32>
    %268 = vector.broadcast %267 : vector<16x1xf32> to vector<16x32xf32>
    %269 = arith.mulf %264, %268 : vector<16x32xf32>
    %270 = vector.broadcast %176 : vector<1x32xf32> to vector<16x32xf32>
    %271 = arith.mulf %269, %270 : vector<16x32xf32>
    %272 = vector.broadcast %178 : vector<1x32xf32> to vector<16x32xf32>
    %273 = arith.addf %271, %272 : vector<16x32xf32>
    %c0_130 = arith.constant 0 : index
    %c0_131 = arith.constant 0 : index
    %274 = vector.load %arg13[%c0_130, %c0_131] : memref<1x32xf32, #tpu.memory_space<vmem>>, vector<1x32xf32>
    %c0_132 = arith.constant 0 : index
    %c0_133 = arith.constant 0 : index
    %275 = vector.load %arg14[%c0_132, %c0_133] : memref<1x32xf32, #tpu.memory_space<vmem>>, vector<1x32xf32>
    %cst_134 = arith.constant dense<0.000000e+00> : vector<16xf32>
    %276 = vector.multi_reduction <add>, %273, %cst_134 [1] : vector<16x32xf32> to vector<16xf32>
    %277 = vector.shape_cast %276 : vector<16xf32> to vector<16x1xf32>
    %cst_135 = arith.constant 3.200000e+01 : f32
    %278 = vector.broadcast %cst_135 : f32 to vector<16x1xf32>
    %279 = arith.divf %277, %278 : vector<16x1xf32>
    %280 = vector.broadcast %279 : vector<16x1xf32> to vector<16x32xf32>
    %281 = arith.subf %273, %280 : vector<16x32xf32>
    %282 = arith.mulf %281, %281 : vector<16x32xf32>
    %cst_136 = arith.constant dense<0.000000e+00> : vector<16xf32>
    %283 = vector.multi_reduction <add>, %282, %cst_136 [1] : vector<16x32xf32> to vector<16xf32>
    %284 = vector.shape_cast %283 : vector<16xf32> to vector<16x1xf32>
    %cst_137 = arith.constant 3.200000e+01 : f32
    %285 = vector.broadcast %cst_137 : f32 to vector<16x1xf32>
    %286 = arith.divf %284, %285 : vector<16x1xf32>
    %287 = vector.broadcast %279 : vector<16x1xf32> to vector<16x32xf32>
    %288 = arith.subf %273, %287 : vector<16x32xf32>
    %cst_138 = arith.constant 9.99999974E-6 : f32
    %289 = vector.broadcast %cst_138 : f32 to vector<16x1xf32>
    %290 = arith.addf %286, %289 : vector<16x1xf32>
    %291 = math.rsqrt %290 : vector<16x1xf32>
    %292 = vector.broadcast %291 : vector<16x1xf32> to vector<16x32xf32>
    %293 = arith.mulf %288, %292 : vector<16x32xf32>
    %294 = vector.broadcast %274 : vector<1x32xf32> to vector<16x32xf32>
    %295 = arith.mulf %293, %294 : vector<16x32xf32>
    %296 = vector.broadcast %275 : vector<1x32xf32> to vector<16x32xf32>
    %297 = arith.addf %295, %296 : vector<16x32xf32>
    %c0_139 = arith.constant 0 : index
    %c0_140 = arith.constant 0 : index
    %298 = vector.load %arg15[%c0_139, %c0_140] : memref<16x32xf32, #tpu.memory_space<vmem>>, vector<16x32xf32>
    tpu.vector_store %arg15[%c0_139, %c0_140], %297 {strides = array<i32>} : memref<16x32xf32, #tpu.memory_space<vmem>>, vector<16x32xf32>,
    return
  }
}

</mosaic_0001>

<bundles_post_ra>
// kernel: tpu_custom_call.1
= control target key start
LH: loop header
LB: loop body
LE: loop exit
PB: predicated region body
PF: predicated region fallthrough
CT: control target
= control target key end

     0   :  { %20 = vsyncpa [#allocation3], 0  ;;  %s1989_s0 = inlined_call_operand.hbm [shape: f32[16,32], index: 0, kind: input, shape index: {}]   ;;  %s1990_s1 = inlined_call_operand.vmem [shape: f32[2,32,96], index: 1, kind: input, shape index: {}]   ;;  %s1991_s2 = inlined_call_operand.hbm [shape: f32[2,1,96], index: 2, kind: input, shape index: {}]   ;;  %s1992_s3 = inlined_call_operand.vmem [shape: f32[2,32,32], index: 3, kind: input, shape index: {}]   ;;  %s1993_s4 = inlined_call_operand.vmem [shape: f32[2,1,32], index: 4, kind: input, shape index: {}]   ;;  %s1994_s5 = inlined_call_operand.hbm [shape: f32[2,1,32], index: 5, kind: input, shape index: {}]   ;;  %s1995_s6 = inlined_call_operand.vmem [shape: f32[2,1,32], index: 6, kind: input, shape index: {}]   ;;  %s1996_s7 = inlined_call_operand.vmem [shape: f32[2,32,64], index: 7, kind: input, shape index: {}]   ;;  %s1997_s8 = inlined_call_operand.hbm [shape: f32[2,1,64], index: 8, kind: input, shape index: {}]   ;;  %s1998_s9 = inlined_call_operand.vmem [shape: f32[2,64,32], index: 9, kind: input, shape index: {}]   ;;  %s1999_s10 = inlined_call_operand.vmem [shape: f32[2,1,32], index: 10, kind: input, shape index: {}]   ;;  %s2000_s11 = inlined_call_operand.vmem [shape: f32[2,1,32], index: 11, kind: input, shape index: {}]   ;;  %s2001_s12 = inlined_call_operand.vmem [shape: f32[2,1,32], index: 12, kind: input, shape index: {}]   ;;  %s2002_s13 = inlined_call_operand.vmem [shape: f32[1,32], index: 13, kind: input, shape index: {}]   ;;  %s2003_s14 = inlined_call_operand.hbm [shape: f32[1,32], index: 14, kind: input, shape index: {}]   ;;  %s2004_s15 = inlined_call_operand.hbm [shape: f32[16,32], index: 15, kind: output, shape index: {}]  }
   0x1   :  { %21 = vsyncpa [#allocation6], 0 }
   0x2   :  { %22 = vsyncpa [#allocation9], 0  ;;  %s43_s20 = sshll.u32 %s1991_s2, 4  ;;  %s44_s20 = int_to_ptr.hbm [resolvable:$true] %s43_s20 }
   0x3   :  { %23 = vsyncpa [#allocation4], 0  ;;  %s1546_s21 = smov [#allocation5]   ;;  %s77_s25 = sshll.u32 %s1997_s8, 4  ;;  %s78_s25 = int_to_ptr.hbm [resolvable:$true] %s77_s25 }
   0x4   :  { %s45_s22 = sshll.u32 %s1546_s21, 4  ;;  %s1547_s26 = smov 16   ;;  %s46_s22 = int_to_ptr.vmem [resolvable:$true] %s45_s22 }
   0x5   :  { %s1548_s27 = smov 1   ;;  %s1549_s28 = smov [#allocation8]  }
   0x6   :  { %51 = dma.hbm_to_vmem [thread:$0]  %s44_s20, 32, %s46_s22, [#allocation6], %s1547_s26, %s1547_s26, %s1548_s27  }
   0x7   :  { %s79_s29 = sshll.u32 %s1549_s28, 4  ;;  %s28_s2 = sshll.u32 %s1989_s0, 4  ;;  %s80_s29 = int_to_ptr.vmem [resolvable:$true] %s79_s29  ;;  %s29_s2 = int_to_ptr.hbm [resolvable:$true] %s28_s2 }
   0x8   :  { %85 = dma.hbm_to_vmem [thread:$0]  %s78_s25, 32, %s80_s29, [#allocation9], %s1547_s26, %s1547_s26, %s1548_s27  }
   0x9   :  { %s1550_s17 = smov [#allocation2]   ;;  %s60_s21 = sshll.u32 %s1994_s5, 4  ;;  %s61_s21 = int_to_ptr.hbm [resolvable:$true] %s60_s21 }
   0xa   :  { %s30_s18 = sshll.u32 %s1550_s17, 4  ;;  %s1551_s20 = smov 128   ;;  %s31_s18 = int_to_ptr.vmem [resolvable:$true] %s30_s18 }
   0xb   :  { %s1552_s22 = smov 8   ;;  %s1553_s0 = smov [#allocation7]  }
   0xc   :  { %36 = dma.hbm_to_vmem [thread:$0]  %s29_s2, 256, %s31_s18, [#allocation3], %s1551_s20, %s1551_s20, %s1552_s22  }
   0xd   :  { %s62_s23 = sshll.u32 %s1553_s0, 4  ;;  %s101_s25 = sshll.u32 %s2003_s14, 4  ;;  %s63_s23 = int_to_ptr.vmem [resolvable:$true] %s62_s23  ;;  %s102_s25 = int_to_ptr.hbm [resolvable:$true] %s101_s25 }
   0xe   :  { %68 = dma.hbm_to_vmem [thread:$0]  %s61_s21, 32, %s63_s23, [#allocation6], %s1547_s26, %s1547_s26, %s1548_s27  }
   0xf   :  { %s1554_s29 = smov [#allocation10]  }
  0x10   :  { %s103_s5 = sshll.u32 %s1554_s29, 4  ;;  %s104_s5 = int_to_ptr.vmem [resolvable:$true] %s103_s5 }
  0x11   :  { %106 = dma.hbm_to_vmem [thread:$0]  %s102_s25, 16, %s104_s5, [#allocation9]  }
  0x12   :  { %1538 = dma.done.wait [#allocation3], 256  }
  0x13   :  { %1539 = vsyncadd [#allocation3], 4294967040 }
  0x14   :  { %1540 = dma.done.wait [#allocation6], 64  }
  0x15   :  { %1541 = vsyncadd [#allocation6], 4294967232 }
  0x16   :  { %1542 = dma.done.wait [#allocation9], 48  }
  0x17   :  { %1543 = vsyncadd [#allocation9], 4294967248  ;;  %v175_v0 = vld [vmem:[%s1990_s1 + $0x18] sm:$0xff]  ;;  %v174_v1 = vld [vmem:[%s1990_s1 + $0x10] sm:$0xff]  ;;  %vm203_vm0 = vcmask 261120   ;;  %s1555_s19 = smov 112   ;;  %v129_v17 = vlaneseq }
  0x18   :  { %222 = vmatpush.msra.mxu0 %v175_v0  ;;  %v173_v2 = vld [vmem:[%s1990_s1 + $0x8] sm:$0xff]  ;;  %v172_v3 = vld [vmem:[%s1990_s1] sm:$0xff]  ;;  %v1322_v6 = vld [vmem:[#allocation5] ss:$0 sm:$0xff]  ;;  %s1556_s21 = smov 80   ;;  %s1557_s0 = smov 96  }
  0x19   :  { %v1678_v4 = vld [vmem:[#allocation2] sm:$0xff]  ;;  %v1682_v5 = vld [vmem:[#allocation2 + $0x8] sm:$0xff]  ;;  %vm239_vm1 = vcmask 130048   ;;  %v130_v18 = vshrl.u32 %v129_v17, 7  ;;  %v133_v19 = vand.u32 127, %v129_v17  ;;  %s1558_s23 = smov 64  }
  0x1a   :  { %223 = vmatpush.msra.mxu0 %v174_v1  ;;  %s1559_s24 = smov 48   ;;  %v178_v17 = vld [vmem:[%s1992_s3 + $0x8] sm:$0xff]  ;;  %vm570_vm11 = vcmask 523264   ;;  %s1206_s28 = sshll.u32 %s2004_s15, 4  ;;  %s1207_s28 = int_to_ptr.hbm [resolvable:$true] %s1206_s28 }
  0x1b   :  { %v138_v20 = vand.u32 1, %v130_v18  ;;  %v162_v21 = vand.u32 1, %v133_v19  ;;  %v131_v23 = vadd.s32 8, %v130_v18 }
  0x1c   :  { %224 = vmatpush.msra.mxu0 %v173_v2 }
  0x1d   :  { %vm1700_vm2 = vcmp.eq.s32.totalorder %v138_v20, %v162_v21  ;;  %v145_v27 = vand.u32 1, %v131_v23  ;;  %v177_v23 = vld [vmem:[%s1992_s3] sm:$0xff] }
  0x1e   :  { %225 = vmatpush.msra.mxu0 %v172_v3 }
  0x1f   :  { %1221 = vmatmul.msk.f32.vlgmr.msra.gmra.mxu0 %vm203_vm0, %v1678_v4  ;;  %vm1707_vm3 = vcmp.eq.s32.totalorder %v145_v27, %v162_v21 }
  0x27   :  { %1222 = vmatmul.msk.f32.gmra.mxu0 %vm203_vm0, %v1682_v5 }
  0x9c   :  { %v227_v7 = vpop.f32.mrf.mxu0 }
  0x9d   :  { %v228_v8 = vadd.f32 %v1322_v6, %v227_v7 }
  0x9f   :  { %330 = vrot.lane.b32.xlu2 %v228_v8, %s1555_s19 }
  0xa4   :  { %v230_v9 = vpop.f32.mrf.mxu0 }
  0xa5   :  { %v231_v10 = vadd.f32 %v1322_v6, %v230_v9 }
  0xa7   :  { %336 = vrot.lane.b32.xlu1 %v231_v10, %s1556_s21  ;;  %237 = vrot.lane.b32.xlu0 %v231_v10, %s1557_s0  ;;  %v1302_v38 = vpack.i.bf16 %v228_v8, %v231_v10 }
  0xa8   :  { %332 = vrot.lane.b32.xlu2 %v231_v10, %s1555_s19 }
  0xaf   :  { %334 = vrot.lane.b32.xlu1 %v228_v8, %s1556_s21  ;;  %235 = vrot.lane.b32.xlu0 %v228_v8, %s1557_s0 }
  0xf9   :  { %v331_v15 = vpop.permute.xlu2 %330 }
 0x102   :  { %v333_v16 = vpop.permute.xlu2 %332 }
 0x119   :  { %v337_v11 = vpop.permute.xlu1 %336  ;;  %v238_v12 = vpop.permute.xlu0 %237 }
 0x11a   :  { %1223 = vmatpush.xpose.msk.msra.mxu1 %vm239_vm1, %v238_v12  ;;  %1229 = vmatpush.xpose.msk.msra.mxu3 %vm239_vm1, %v337_v11 }
 0x121   :  { %v335_v13 = vpop.permute.xlu1 %334  ;;  %v236_v14 = vpop.permute.xlu0 %235 }
 0x122   :  { %1224 = vmatpush.xpose.msk.msra.mxu1 %vm239_vm1, %v236_v14  ;;  %1230 = vmatpush.xpose.msk.msra.mxu3 %vm239_vm1, %v335_v13 }
 0x125   :  { %1225 = vmatmul.msk.f32.vlgmr.msra.gmra.mxu1 %vm239_vm1, %v228_v8  ;;  %1231 = vmatmul.msk.f32.vlgmr.msra.gmra.mxu3 %vm239_vm1, %v331_v15  ;;  %v180_v15 = vld [vmem:[%s1992_s3 + $0x18] sm:$0xff] }
 0x126   :  { %459 = vmatpush.msrb.mxu0 %v180_v15 }
 0x12d   :  { %1226 = vmatmul.msk.f32.gmra.mxu1 %vm239_vm1, %v231_v10  ;;  %1232 = vmatmul.msk.f32.gmra.mxu3 %vm239_vm1, %v333_v16  ;;  %v179_v16 = vld [vmem:[%s1992_s3 + $0x10] sm:$0xff] }
 0x12e   :  { %460 = vmatpush.msrb.mxu0 %v179_v16 }
 0x130   :  { %461 = vmatpush.msrb.mxu0 %v178_v17 }
 0x132   :  { %462 = vmatpush.msrb.mxu0 %v177_v23 }
 0x1a2   :  { %v265_v24 = vpop.f32.mrf.mxu1 }
 0x1a3   :  { %v271_v25 = vsel %vm1700_vm2, %v265_v24, -1e+30 }
 0x1a4   :  { %v273_v26 = vsel %vm239_vm1, %v271_v25, -inf }
 0x1a5   :  { %274 = vmax.xlane.f32.xlu0 %v273_v26 }
 0x1a8   :  { %v363_v28 = vpop.f32.mrf.mxu3 }
 0x1a9   :  { %v369_v30 = vsel %vm1700_vm2, %v363_v28, -1e+30  ;;  %v1323_v28 = vld [vmem:[%s1993_s4] ss:$0 sm:$0xff] }
 0x1aa   :  { %v268_v31 = vpop.f32.mrf.mxu1  ;;  %v371_v32 = vsel %vm239_vm1, %v369_v30, -inf }
 0x1ab   :  { %v272_v33 = vsel %vm1707_vm3, %v268_v31, -1e+30  ;;  %372 = vmax.xlane.f32.xlu2 %v371_v32 }
 0x1ac   :  { %v276_v34 = vsel %vm239_vm1, %v272_v33, -inf }
 0x1ad   :  { %277 = vmax.xlane.f32.xlu1 %v276_v34 }
 0x1b0   :  { %v366_v35 = vpop.f32.mrf.mxu3 }
 0x1b1   :  { %v370_v36 = vsel %vm1707_vm3, %v366_v35, -1e+30 }
 0x1b2   :  { %v374_v37 = vsel %vm239_vm1, %v370_v36, -inf }
 0x1b3   :  { %375 = vmax.xlane.f32.xlu2 %v374_v37 }
 0x1c6   :  { %1303 = vrot.lane.b32.xlu1 %v1302_v38, %s1558_s23 }
 0x218   :  { %v275_v39 = vpop.xlane.xlu0 %274 }
 0x219   :  { %v279_v40 = vsub.f32 %v271_v25, %v275_v39 }
 0x21b   :  { %v281_v41 = vmul.f32 1.442695, %v279_v40 }
 0x21d   :  { %1340 = vpow2.f32 %v281_v41 }
 0x21e   :  { %v373_v42 = vpop.xlane.xlu2 %372 }
 0x21f   :  { %v377_v43 = vsub.f32 %v369_v30, %v373_v42 }
 0x220   :  { %v278_v44 = vpop.xlane.xlu1 %277 }
 0x221   :  { %v379_v45 = vmul.f32 1.442695, %v377_v43  ;;  %v280_v46 = vsub.f32 %v272_v33, %v278_v44 }
 0x223   :  { %v1341_v47 = vpop.eup %1340  ;;  %1342 = vpow2.f32 %v379_v45  ;;  %v283_v48 = vmul.f32 1.442695, %v280_v46 }
 0x224   :  { %v285_v49 = vsel %vm239_vm1, %v1341_v47, 0.0 }
 0x225   :  { %1344 = vpow2.f32 %v283_v48  ;;  %286 = vadd.xlane.f32.xlu0 %v285_v49 }
 0x226   :  { %v376_v50 = vpop.xlane.xlu2 %375 }
 0x227   :  { %v378_v51 = vsub.f32 %v370_v36, %v376_v50 }
 0x229   :  { %v1343_v52 = vpop.eup %1342  ;;  %v381_v53 = vmul.f32 1.442695, %v378_v51 }
 0x22a   :  { %v383_v55 = vsel %vm239_vm1, %v1343_v52, 0.0 }
 0x22b   :  { %v1345_v54 = vpop.eup %1344  ;;  %1346 = vpow2.f32 %v381_v53  ;;  %v187_v53 = vld [vmem:[%s1996_s7 + $0x18] sm:$0xff] }
 0x22c   :  { %v288_v56 = vsel %vm239_vm1, %v1345_v54, 0.0  ;;  %554 = vmatpush.msrb.mxu1 %v187_v53 }
 0x22d   :  { %384 = vadd.xlane.f32.xlu0 %v383_v55  ;;  %289 = vadd.xlane.f32.xlu2 %v288_v56  ;;  %v185_v55 = vld [vmem:[%s1996_s7 + $0x8] sm:$0xff]  ;;  %v184_v56 = vld [vmem:[%s1996_s7] sm:$0xff] }
 0x231   :  { %v1347_v57 = vpop.eup %1346 }
 0x232   :  { %v386_v58 = vsel %vm239_vm1, %v1347_v57, 0.0 }
 0x235   :  { %387 = vadd.xlane.f32.xlu0 %v386_v58 }
 0x238   :  { %v1304_v59 = vpop.permute.xlu1 %1303 }
 0x239   :  { %v1305_v60 = vunpack.i.l.bf16 %v1304_v59  ;;  %v1306_v61 = vunpack.i.h.bf16 %v1304_v59 }
 0x23b   :  { %321 = vmatpush.msra.mxu2 %v1305_v60  ;;  %v196_v60 = vld [vmem:[%s1998_s9 + $0x38] sm:$0xff] }
 0x23c   :  { %585 = vmatpush.msrb.mxu3 %v196_v60  ;;  %v1242_v60 = vld [vmem:[%s1990_s1 + $0x28] sm:$0xff] }
 0x23d   :  { %322 = vmatpush.msra.mxu2 %v1306_v61  ;;  %v195_v61 = vld [vmem:[%s1998_s9 + $0x30] sm:$0xff] }
 0x23e   :  { %586 = vmatpush.msrb.mxu3 %v195_v61  ;;  %v1241_v61 = vld [vmem:[%s1990_s1 + $0x20] sm:$0xff] }
 0x245   :  { %1308 = vrot.lane.b32.xlu2 %v1302_v38, %s1559_s24  ;;  %v1560_v38 = vmov 32.0  }
 0x298   :  { %v287_v62 = vpop.xlane.xlu0 %286 }
 0x299   :  { %1348 = vrcp.f32 %v287_v62  ;;  %v194_v62 = vld [vmem:[%s1998_s9 + $0x28] sm:$0xff] }
 0x29a   :  { %587 = vmatpush.msrb.mxu3 %v194_v62 }
 0x29f   :  { %v1349_v63 = vpop.eup %1348 }
 0x2a0   :  { %v290_v0 = vpop.xlane.xlu2 %289  ;;  %v293_v1 = vmul.f32 %v1349_v63, %v1341_v47  ;;  %v385_v2 = vpop.xlane.xlu0 %384 }
 0x2a1   :  { %1350 = vrcp.f32 %v290_v0 }
 0x2a2   :  { %1227 = vmatmul.msk.f32.vlgmr.msra.gmra.mxu2 %vm239_vm1, %v293_v1  ;;  %1352 = vrcp.f32 %v385_v2  ;;  %v193_v1 = vld [vmem:[%s1998_s9 + $0x20] sm:$0xff] }
 0x2a3   :  { %588 = vmatpush.msrb.mxu3 %v193_v1 }
 0x2a7   :  { %v1351_v3 = vpop.eup %1350 }
 0x2a8   :  { %v1309_v6 = vpop.permute.xlu2 %1308  ;;  %v294_v7 = vmul.f32 %v1351_v3, %v1345_v54  ;;  %v388_v10 = vpop.xlane.xlu0 %387  ;;  %v186_v54 = vld [vmem:[%s1996_s7 + $0x10] sm:$0xff] }
 0x2a9   :  { %v1310_v8 = vunpack.i.l.bf16 %v1309_v6  ;;  %v1311_v9 = vunpack.i.h.bf16 %v1309_v6  ;;  %v1353_v11 = vpop.eup %1352  ;;  %1354 = vrcp.f32 %v388_v10  ;;  %555 = vmatpush.msrb.mxu1 %v186_v54  ;;  %v192_v6 = vld [vmem:[%s1998_s9 + $0x18] sm:$0xff] }
 0x2aa   :  { %1228 = vmatmul.msk.f32.gmra.mxu2 %vm239_vm1, %v294_v7  ;;  %v391_v12 = vmul.f32 %v1353_v11, %v1343_v52  ;;  %1356 = vrcp.f32 %v1560_v38  ;;  %589 = vmatpush.msrb.mxu3 %v192_v6 }
 0x2ab   :  { %419 = vmatpush.msrb.mxu2 %v1310_v8  ;;  %556 = vmatpush.msrb.mxu1 %v185_v55 }
 0x2ad   :  { %420 = vmatpush.msrb.mxu2 %v1311_v9  ;;  %557 = vmatpush.msrb.mxu1 %v184_v56 }
 0x2af   :  { %v1355_v13 = vpop.eup %1354 }
 0x2b0   :  { %v392_v14 = vmul.f32 %v1355_v13, %v1347_v57  ;;  %v1357_v39 = vpop.eup %1356 }
 0x2b1   :  { %v479_v40 = vmul.f32 32.0, %v1357_v39  ;;  %vm483_vm4 = vweird.f32 %v1357_v39 }
 0x2b2   :  { %1233 = vmatmul.msk.f32.vlgmr.msrb.gmra.mxu2 %vm239_vm1, %v391_v12 }
 0x2b3   :  { %v480_v41 = vsub.f32 1.0, %v479_v40  ;;  %v1327_v40 = vld [vmem:[%s1999_s10] ss:$0 sm:$0xff] }
 0x2b5   :  { %v481_v42 = vmul.f32 %v1357_v39, %v480_v41 }
 0x2b7   :  { %v482_v43 = vadd.f32 %v1357_v39, %v481_v42 }
 0x2b9   :  { %v1755_v44 = vsel %vm483_vm4, %v1357_v39, %v482_v43 }
 0x2ba   :  { %1234 = vmatmul.msk.f32.gmra.mxu2 %vm239_vm1, %v392_v14  ;;  %v1324_v14 = vld [vmem:[#allocation7] ss:$0 sm:$0xff] }
 0x325   :  { %v324_v18 = vpop.f32.mrf.mxu2 }
 0x32d   :  { %v327_v19 = vpop.f32.mrf.mxu2 }
 0x335   :  { %v422_v20 = vpop.f32.mrf.mxu2 }
 0x336   :  { %430 = vrot.lane.b32.xlu0 %v422_v20, %s1547_s26 }
 0x33d   :  { %v425_v21 = vpop.f32.mrf.mxu2 }
 0x33e   :  { %432 = vrot.lane.b32.xlu1 %v425_v21, %s1547_s26 }
 0x3a8   :  { %v431_v24 = vpop.permute.xlu0 %430 }
 0x3a9   :  { %v436_v25 = vsel %vm239_vm1, %v324_v18, %v431_v24  ;;  %v1325_v18 = vld [vmem:[%s1995_s6] ss:$0 sm:$0xff] }
 0x3aa   :  { %1235 = vmatmul.msk.f32.vlgmr.msrb.gmra.mxu0 %vm203_vm0, %v436_v25 }
 0x3b0   :  { %v433_v26 = vpop.permute.xlu1 %432 }
 0x3b1   :  { %v437_v27 = vsel %vm239_vm1, %v327_v19, %v433_v26 }
 0x3b2   :  { %1236 = vmatmul.msk.f32.gmra.mxu0 %vm203_vm0, %v437_v27 }
 0x427   :  { %v464_v30 = vpop.f32.mrf.mxu0 }
 0x428   :  { %v465_v31 = vadd.f32 %v1323_v28, %v464_v30  ;;  %v191_v30 = vld [vmem:[%s1998_s9 + $0x10] sm:$0xff] }
 0x429   :  { %590 = vmatpush.msrb.mxu3 %v191_v30  ;;  %v1330_v30 = vld [vmem:[#allocation5 + $0x1] ss:$0 sm:$0xff] }
 0x42a   :  { %v470_v32 = vadd.f32 %v465_v31, %v1678_v4  ;;  %v190_v31 = vld [vmem:[%s1998_s9 + $0x8] sm:$0xff] }
 0x42b   :  { %591 = vmatpush.msrb.mxu3 %v190_v31 }
 0x42c   :  { %v472_v33 = vsel %vm203_vm0, %v470_v32, 0.0 }
 0x42d   :  { %473 = vadd.xlane.f32.xlu1 %v472_v33  ;;  %v1326_v33 = vld [vmem:[#allocation8] ss:$0 sm:$0xff] }
 0x42f   :  { %v467_v34 = vpop.f32.mrf.mxu0 }
 0x430   :  { %v468_v35 = vadd.f32 %v1323_v28, %v467_v34 }
 0x432   :  { %v471_v36 = vadd.f32 %v468_v35, %v1682_v5 }
 0x434   :  { %v475_v37 = vsel %vm203_vm0, %v471_v36, 0.0 }
 0x435   :  { %476 = vadd.xlane.f32.xlu2 %v475_v37 }
 0x4a0   :  { %v474_v4 = vpop.xlane.xlu1 %473 }
 0x4a1   :  { %v485_v45 = vmul.f32 %v1755_v44, %v474_v4 }
 0x4a3   :  { %v487_v46 = vsub.f32 %v470_v32, %v485_v45  ;;  %v189_v32 = vld [vmem:[%s1998_s9] sm:$0xff] }
 0x4a4   :  { %592 = vmatpush.msrb.mxu3 %v189_v32 }
 0x4a5   :  { %v489_v47 = vmul.f32 %v487_v46, %v487_v46 }
 0x4a7   :  { %v491_v5 = vsel %vm203_vm0, %v489_v47, 0.0 }
 0x4a8   :  { %v477_v48 = vpop.xlane.xlu2 %476  ;;  %492 = vadd.xlane.f32.xlu0 %v491_v5 }
 0x4a9   :  { %v486_v49 = vmul.f32 %v1755_v44, %v477_v48 }
 0x4ab   :  { %v488_v50 = vsub.f32 %v471_v36, %v486_v49 }
 0x4ad   :  { %v490_v51 = vmul.f32 %v488_v50, %v488_v50 }
 0x4af   :  { %v494_v52 = vsel %vm203_vm0, %v490_v51, 0.0 }
 0x4b0   :  { %495 = vadd.xlane.f32.xlu1 %v494_v52 }
 0x51b   :  { %v493_v57 = vpop.xlane.xlu0 %492 }
 0x51c   :  { %v497_v58 = vmul.f32 %v493_v57, %v1755_v44 }
 0x51e   :  { %v499_v59 = vadd.f32 1e-05, %v497_v58  ;;  %v1244_v58 = vld [vmem:[%s1990_s1 + $0x38] sm:$0xff] }
 0x51f   :  { %717 = vmatpush.msra.mxu2 %v1244_v58 }
 0x520   :  { %1358 = vrsqrt.f32 %v499_v59  ;;  %vm507_vm6 = vweird.f32 %v499_v59 }
 0x523   :  { %v496_v63 = vpop.xlane.xlu1 %495 }
 0x524   :  { %v498_v0 = vmul.f32 %v496_v63, %v1755_v44 }
 0x526   :  { %v1359_v2 = vpop.eup %1358  ;;  %v500_v3 = vadd.f32 1e-05, %v498_v0 }
 0x527   :  { %v502_v7 = vmul.f32 %v1359_v2, %v499_v59  ;;  %vm508_vm5 = vweird.f32 %v1359_v2  ;;  %v1243_v59 = vld [vmem:[%s1990_s1 + $0x30] sm:$0xff]  ;;  %s1561_s1 = smov [#allocation11]  }
 0x528   :  { %1360 = vrsqrt.f32 %v500_v3  ;;  %vm509_vm7 = vmor %vm507_vm6, %vm508_vm5  ;;  %vm517_vm9 = vweird.f32 %v500_v3  ;;  %718 = vmatpush.msra.mxu2 %v1243_v59  ;;  %s1204_s18 = sshll.u32 %s1561_s1, 4  ;;  %s1205_s18 = int_to_ptr.vmem [resolvable:$true] %s1204_s18 }
 0x529   :  { %v503_v8 = vmul.f32 %v1359_v2, %v502_v7 }
 0x52a   :  { %719 = vmatpush.msra.mxu2 %v1242_v60 }
 0x52b   :  { %v504_v9 = vmul.f32 0.5, %v503_v8 }
 0x52c   :  { %720 = vmatpush.msra.mxu2 %v1241_v61 }
 0x52d   :  { %v505_v10 = vsub.f32 1.5, %v504_v9 }
 0x52e   :  { %v1361_v11 = vpop.eup %1360 }
 0x52f   :  { %v506_v12 = vmul.f32 %v1359_v2, %v505_v10  ;;  %v512_v13 = vmul.f32 %v1361_v11, %v500_v3  ;;  %vm518_vm8 = vweird.f32 %v1361_v11 }
 0x530   :  { %vm519_vm10 = vmor %vm517_vm9, %vm518_vm8 }
 0x531   :  { %v510_v15 = vsel %vm509_vm7, %v1359_v2, %v506_v12  ;;  %v513_v16 = vmul.f32 %v1361_v11, %v512_v13 }
 0x532   :  { %v521_v17 = vmul.f32 %v510_v15, %v487_v46 }
 0x533   :  { %v514_v19 = vmul.f32 0.5, %v513_v16 }
 0x534   :  { %v526_v20 = vmul.f32 %v1324_v14, %v521_v17 }
 0x535   :  { %v515_v21 = vsub.f32 1.5, %v514_v19 }
 0x536   :  { %v531_v23 = vadd.f32 %v1325_v18, %v526_v20 }
 0x537   :  { %v516_v24 = vmul.f32 %v1361_v11, %v515_v21 }
 0x538   :  { %1237 = vmatmul.msk.f32.vlgmr.msrb.gmra.mxu1 %vm203_vm0, %v531_v23 }
 0x539   :  { %v520_v25 = vsel %vm519_vm10, %v1361_v11, %v516_v24 }
 0x53a   :  { %v522_v26 = vmul.f32 %v520_v25, %v488_v50 }
 0x53c   :  { %v527_v27 = vmul.f32 %v1324_v14, %v522_v26  ;;  %v1328_v14 = vld [vmem:[%s2000_s11] ss:$0 sm:$0xff] }
 0x53e   :  { %v532_v28 = vadd.f32 %v1325_v18, %v527_v27  ;;  %v1329_v18 = vld [vmem:[%s2001_s12] ss:$0 sm:$0xff] }
 0x540   :  { %1238 = vmatmul.msk.f32.gmra.mxu1 %vm203_vm0, %v532_v28 }
 0x5b5   :  { %v559_v34 = vpop.f32.mrf.mxu1 }
 0x5b6   :  { %v560_v35 = vadd.f32 %v1326_v33, %v559_v34 }
 0x5b8   :  { %v565_v36 = vmax.f32 %v560_v35, 0.0 }
 0x5ba   :  { %1239 = vmatmul.msk.f32.vlgmr.msrb.gmra.mxu3 %vm570_vm11, %v565_v36 }
 0x5bd   :  { %v562_v37 = vpop.f32.mrf.mxu1 }
 0x5be   :  { %v563_v38 = vadd.f32 %v1326_v33, %v562_v37 }
 0x5c0   :  { %v566_v39 = vmax.f32 %v563_v38, 0.0 }
 0x5c2   :  { %1240 = vmatmul.msk.f32.gmra.mxu3 %vm570_vm11, %v566_v39 }
 0x63d   :  { %v594_v41 = vpop.f32.mrf.mxu3 }
 0x63e   :  { %v595_v42 = vadd.f32 %v1327_v40, %v594_v41 }
 0x640   :  { %v600_v43 = vadd.f32 %v595_v42, %v531_v23 }
 0x642   :  { %v602_v4 = vsel %vm203_vm0, %v600_v43, 0.0 }
 0x643   :  { %603 = vadd.xlane.f32.xlu2 %v602_v4 }
 0x645   :  { %v597_v45 = vpop.f32.mrf.mxu3 }
 0x646   :  { %v598_v46 = vadd.f32 %v1327_v40, %v597_v45 }
 0x648   :  { %v601_v47 = vadd.f32 %v598_v46, %v532_v28 }
 0x64a   :  { %v605_v5 = vsel %vm203_vm0, %v601_v47, 0.0 }
 0x64b   :  { %606 = vadd.xlane.f32.xlu1 %v605_v5 }
 0x6b6   :  { %v604_v48 = vpop.xlane.xlu2 %603 }
 0x6b7   :  { %v608_v49 = vmul.f32 %v604_v48, %v1755_v44 }
 0x6b9   :  { %v610_v50 = vsub.f32 %v600_v43, %v608_v49 }
 0x6bb   :  { %v612_v51 = vmul.f32 %v610_v50, %v610_v50 }
 0x6bd   :  { %v614_v52 = vsel %vm203_vm0, %v612_v51, 0.0 }
 0x6be   :  { %615 = vadd.xlane.f32.xlu0 %v614_v52  ;;  %v607_v53 = vpop.xlane.xlu1 %606 }
 0x6bf   :  { %v609_v54 = vmul.f32 %v607_v53, %v1755_v44 }
 0x6c1   :  { %v611_v55 = vsub.f32 %v601_v47, %v609_v54 }
 0x6c3   :  { %v613_v56 = vmul.f32 %v611_v55, %v611_v55 }
 0x6c5   :  { %v617_v57 = vsel %vm203_vm0, %v613_v56, 0.0 }
 0x6c6   :  { %618 = vadd.xlane.f32.xlu2 %v617_v57 }
 0x731   :  { %v616_v62 = vpop.xlane.xlu0 %615 }
 0x732   :  { %v620_v63 = vmul.f32 %v616_v62, %v1755_v44 }
 0x734   :  { %v622_v0 = vadd.f32 1e-05, %v620_v63 }
 0x736   :  { %1362 = vrsqrt.f32 %v622_v0  ;;  %vm630_vm13 = vweird.f32 %v622_v0 }
 0x739   :  { %v619_v1 = vpop.xlane.xlu2 %618 }
 0x73a   :  { %v621_v2 = vmul.f32 %v619_v1, %v1755_v44 }
 0x73c   :  { %v1363_v3 = vpop.eup %1362  ;;  %v623_v6 = vadd.f32 1e-05, %v621_v2 }
 0x73d   :  { %v625_v7 = vmul.f32 %v1363_v3, %v622_v0  ;;  %vm631_vm12 = vweird.f32 %v1363_v3 }
 0x73e   :  { %1364 = vrsqrt.f32 %v623_v6  ;;  %vm632_vm14 = vmor %vm630_vm13, %vm631_vm12  ;;  %vm640_vm4 = vweird.f32 %v623_v6 }
 0x73f   :  { %v626_v8 = vmul.f32 %v1363_v3, %v625_v7 }
 0x741   :  { %v627_v9 = vmul.f32 0.5, %v626_v8 }
 0x743   :  { %v628_v10 = vsub.f32 1.5, %v627_v9 }
 0x744   :  { %v1365_v11 = vpop.eup %1364 }
 0x745   :  { %v629_v12 = vmul.f32 %v1363_v3, %v628_v10  ;;  %v635_v13 = vmul.f32 %v1365_v11, %v623_v6  ;;  %vm641_vm15 = vweird.f32 %v1365_v11 }
 0x746   :  { %vm642_vm5 = vmor %vm640_vm4, %vm641_vm15 }
 0x747   :  { %v633_v15 = vsel %vm632_vm14, %v1363_v3, %v629_v12  ;;  %v636_v16 = vmul.f32 %v1365_v11, %v635_v13 }
 0x748   :  { %v644_v17 = vmul.f32 %v633_v15, %v610_v50 }
 0x749   :  { %v637_v19 = vmul.f32 0.5, %v636_v16 }
 0x74a   :  { %v649_v20 = vmul.f32 %v1328_v14, %v644_v17 }
 0x74b   :  { %v638_v21 = vsub.f32 1.5, %v637_v19 }
 0x74c   :  { %v1835_v23 = vadd.f32 %v1329_v18, %v649_v20 }
 0x74d   :  { %v639_v24 = vmul.f32 %v1365_v11, %v638_v21 }
 0x74e   :  { %1266 = vmatmul.msk.f32.vlgmr.msra.gmra.mxu2 %vm203_vm0, %v1835_v23 }
 0x74f   :  { %v643_v25 = vsel %vm642_vm5, %v1365_v11, %v639_v24 }
 0x750   :  { %v645_v26 = vmul.f32 %v643_v25, %v611_v55 }
 0x752   :  { %v650_v27 = vmul.f32 %v1328_v14, %v645_v26 }
 0x754   :  { %v1839_v28 = vadd.f32 %v1329_v18, %v650_v27 }
 0x756   :  { %1267 = vmatmul.msk.f32.gmra.mxu2 %vm203_vm0, %v1839_v28 }
 0x7d1   :  { %v722_v31 = vpop.f32.mrf.mxu2 }
 0x7d2   :  { %v723_v32 = vadd.f32 %v1330_v30, %v722_v31 }
 0x7d4   :  { %828 = vrot.lane.b32.xlu0 %v723_v32, %s1556_s21  ;;  %824 = vrot.lane.b32.xlu2 %v723_v32, %s1555_s19 }
 0x7d9   :  { %v725_v33 = vpop.f32.mrf.mxu2 }
 0x7da   :  { %v726_v34 = vadd.f32 %v1330_v30, %v725_v33  ;;  %v1248_v33 = vld [vmem:[%s1992_s3 + $0x38] sm:$0xff] }
 0x7dc   :  { %730 = vrot.lane.b32.xlu2 %v723_v32, %s1557_s0  ;;  %826 = vrot.lane.b32.xlu0 %v726_v34, %s1555_s19  ;;  %v1312_v22 = vpack.i.bf16 %v723_v32, %v726_v34 }
 0x7dd   :  { %830 = vrot.lane.b32.xlu1 %v726_v34, %s1556_s21 }
 0x7e5   :  { %732 = vrot.lane.b32.xlu1 %v726_v34, %s1557_s0 }
 0x82e   :  { %v825_v36 = vpop.permute.xlu2 %824 }
 0x836   :  { %v731_v39 = vpop.permute.xlu2 %730 }
 0x846   :  { %v829_v37 = vpop.permute.xlu0 %828 }
 0x84e   :  { %v827_v40 = vpop.permute.xlu0 %826 }
 0x84f   :  { %v831_v35 = vpop.permute.xlu1 %830 }
 0x850   :  { %1274 = vmatpush.xpose.msk.msra.mxu3 %vm239_vm1, %v831_v35  ;;  %v1246_v35 = vld [vmem:[%s1992_s3 + $0x28] sm:$0xff] }
 0x854   :  { %1275 = vmatpush.xpose.msk.msra.mxu3 %vm239_vm1, %v829_v37 }
 0x857   :  { %v733_v38 = vpop.permute.xlu1 %732  ;;  %1276 = vmatmul.msk.f32.vlgmr.msra.gmra.mxu3 %vm239_vm1, %v825_v36  ;;  %v1245_v36 = vld [vmem:[%s1992_s3 + $0x20] sm:$0xff] }
 0x858   :  { %1268 = vmatpush.xpose.msk.msra.mxu0 %vm239_vm1, %v733_v38 }
 0x85c   :  { %1269 = vmatpush.xpose.msk.msra.mxu0 %vm239_vm1, %v731_v39 }
 0x85f   :  { %1270 = vmatmul.msk.f32.vlgmr.msra.gmra.mxu0 %vm239_vm1, %v723_v32  ;;  %1277 = vmatmul.msk.f32.gmra.mxu3 %vm239_vm1, %v827_v40 }
 0x860   :  { %953 = vmatpush.msrb.mxu0 %v1248_v33 }
 0x867   :  { %1271 = vmatmul.msk.f32.gmra.mxu0 %vm239_vm1, %v726_v34  ;;  %v1247_v34 = vld [vmem:[%s1992_s3 + $0x30] sm:$0xff] }
 0x868   :  { %954 = vmatpush.msrb.mxu0 %v1247_v34 }
 0x86a   :  { %955 = vmatpush.msrb.mxu0 %v1246_v35 }
 0x86c   :  { %956 = vmatpush.msrb.mxu0 %v1245_v36  ;;  %v1257_v36 = vld [vmem:[%s1998_s9 + $0x50] sm:$0xff] }
 0x8da   :  { %v857_v41 = vpop.f32.mrf.mxu3 }
 0x8db   :  { %v863_v42 = vsel %vm1700_vm2, %v857_v41, -1e+30 }
 0x8dc   :  { %v759_v43 = vpop.f32.mrf.mxu0  ;;  %v865_v4 = vsel %vm239_vm1, %v863_v42, -inf }
 0x8dd   :  { %v765_v45 = vsel %vm1700_vm2, %v759_v43, -1e+30  ;;  %866 = vmax.xlane.f32.xlu0 %v865_v4  ;;  %v1331_v43 = vld [vmem:[%s1993_s4 + $0x1] ss:$0 sm:$0xff] }
 0x8de   :  { %v767_v46 = vsel %vm239_vm1, %v765_v45, -inf }
 0x8df   :  { %768 = vmax.xlane.f32.xlu2 %v767_v46 }
 0x8e2   :  { %v860_v47 = vpop.f32.mrf.mxu3 }
 0x8e3   :  { %v864_v5 = vsel %vm1707_vm3, %v860_v47, -1e+30 }
 0x8e4   :  { %v868_v48 = vsel %vm239_vm1, %v864_v5, -inf  ;;  %v762_v49 = vpop.f32.mrf.mxu0 }
 0x8e5   :  { %869 = vmax.xlane.f32.xlu1 %v868_v48  ;;  %v766_v50 = vsel %vm1707_vm3, %v762_v49, -1e+30 }
 0x8e6   :  { %v770_v51 = vsel %vm239_vm1, %v766_v50, -inf }
 0x8ed   :  { %771 = vmax.xlane.f32.xlu1 %v770_v51 }
 0x8f7   :  { %1313 = vrot.lane.b32.xlu2 %v1312_v22, %s1559_s24 }
 0x950   :  { %v867_v52 = vpop.xlane.xlu0 %866 }
 0x951   :  { %v871_v53 = vsub.f32 %v863_v42, %v867_v52 }
 0x952   :  { %v769_v54 = vpop.xlane.xlu2 %768 }
 0x953   :  { %v873_v55 = vmul.f32 1.442695, %v871_v53  ;;  %v773_v56 = vsub.f32 %v765_v45, %v769_v54 }
 0x955   :  { %1366 = vpow2.f32 %v873_v55  ;;  %v775_v57 = vmul.f32 1.442695, %v773_v56 }
 0x957   :  { %1368 = vpow2.f32 %v775_v57 }
 0x958   :  { %v870_v58 = vpop.xlane.xlu1 %869 }
 0x959   :  { %v872_v59 = vsub.f32 %v864_v5, %v870_v58 }
 0x95a   :  { %v1314_v60 = vpop.permute.xlu2 %1313 }
 0x95b   :  { %v1367_v61 = vpop.eup %1366  ;;  %v875_v29 = vmul.f32 1.442695, %v872_v59  ;;  %v1315_v62 = vunpack.i.l.bf16 %v1314_v60  ;;  %v1316_v1 = vunpack.i.h.bf16 %v1314_v60  ;;  %v1253_v59 = vld [vmem:[%s1996_s7 + $0x30] sm:$0xff]  ;;  %v1252_v60 = vld [vmem:[%s1996_s7 + $0x28] sm:$0xff] }
 0x95c   :  { %v877_v63 = vsel %vm239_vm1, %v1367_v61, 0.0 }
 0x95d   :  { %v1369_v0 = vpop.eup %1368  ;;  %1370 = vpow2.f32 %v875_v29  ;;  %878 = vadd.xlane.f32.xlu0 %v877_v63  ;;  %913 = vmatpush.msrb.mxu2 %v1315_v62 }
 0x95e   :  { %v779_v2 = vsel %vm239_vm1, %v1369_v0, 0.0 }
 0x95f   :  { %914 = vmatpush.msrb.mxu2 %v1316_v1  ;;  %780 = vadd.xlane.f32.xlu1 %v779_v2  ;;  %v1261_v1 = vld [vmem:[%s1998_s9 + $0x70] sm:$0xff]  ;;  %v1260_v2 = vld [vmem:[%s1998_s9 + $0x68] sm:$0xff] }
 0x960   :  { %v772_v3 = vpop.xlane.xlu1 %771 }
 0x961   :  { %v774_v6 = vsub.f32 %v766_v50, %v772_v3 }
 0x963   :  { %v1371_v7 = vpop.eup %1370  ;;  %v777_v8 = vmul.f32 1.442695, %v774_v6 }
 0x964   :  { %v880_v9 = vsel %vm239_vm1, %v1371_v7, 0.0 }
 0x965   :  { %1372 = vpow2.f32 %v777_v8  ;;  %881 = vadd.xlane.f32.xlu0 %v880_v9 }
 0x96b   :  { %v1373_v10 = vpop.eup %1372 }
 0x96c   :  { %v782_v11 = vsel %vm239_vm1, %v1373_v10, 0.0 }
 0x96d   :  { %783 = vadd.xlane.f32.xlu1 %v782_v11 }
 0x979   :  { %1318 = vrot.lane.b32.xlu0 %v1312_v22, %s1558_s23 }
 0x9d0   :  { %v879_v12 = vpop.xlane.xlu0 %878 }
 0x9d1   :  { %1374 = vrcp.f32 %v879_v12 }
 0x9d2   :  { %v781_v18 = vpop.xlane.xlu1 %780 }
 0x9d7   :  { %v1375_v13 = vpop.eup %1374 }
 0x9d8   :  { %v885_v14 = vmul.f32 %v1375_v13, %v1367_v61  ;;  %v882_v15 = vpop.xlane.xlu0 %881  ;;  %v1251_v61 = vld [vmem:[%s1996_s7 + $0x20] sm:$0xff] }
 0x9d9   :  { %1376 = vrcp.f32 %v882_v15 }
 0x9da   :  { %1278 = vmatmul.msk.f32.vlgmr.msrb.gmra.mxu2 %vm239_vm1, %v885_v14  ;;  %1378 = vrcp.f32 %v781_v18  ;;  %v1332_v18 = vld [vmem:[#allocation7 + $0x1] ss:$0 sm:$0xff] }
 0x9df   :  { %v1377_v16 = vpop.eup %1376 }
 0x9e0   :  { %v886_v17 = vmul.f32 %v1377_v16, %v1371_v7  ;;  %v784_v19 = vpop.xlane.xlu1 %783  ;;  %v1379_v21 = vpop.eup %1378  ;;  %v1259_v7 = vld [vmem:[%s1998_s9 + $0x60] sm:$0xff] }
 0x9e1   :  { %1380 = vrcp.f32 %v784_v19  ;;  %v787_v26 = vmul.f32 %v1379_v21, %v1369_v0  ;;  %v1262_v0 = vld [vmem:[%s1998_s9 + $0x78] sm:$0xff] }
 0x9e2   :  { %1279 = vmatmul.msk.f32.gmra.mxu2 %vm239_vm1, %v886_v17  ;;  %1071 = vmatpush.msrb.mxu3 %v1262_v0 }
 0x9e4   :  { %1072 = vmatpush.msrb.mxu3 %v1261_v1 }
 0x9e6   :  { %1073 = vmatpush.msrb.mxu3 %v1260_v2 }
 0x9e7   :  { %v1381_v27 = vpop.eup %1380 }
 0x9e8   :  { %v788_v30 = vmul.f32 %v1381_v27, %v1373_v10  ;;  %v1258_v10 = vld [vmem:[%s1998_s9 + $0x58] sm:$0xff]  ;;  %1074 = vmatpush.msrb.mxu3 %v1259_v7 }
 0x9ea   :  { %1075 = vmatpush.msrb.mxu3 %v1258_v10 }
 0x9eb   :  { %v1319_v20 = vpop.permute.xlu0 %1318 }
 0x9ec   :  { %v1320_v24 = vunpack.i.l.bf16 %v1319_v20  ;;  %v1321_v25 = vunpack.i.h.bf16 %v1319_v20  ;;  %1076 = vmatpush.msrb.mxu3 %v1257_v36 }
 0x9ee   :  { %815 = vmatpush.msra.mxu1 %v1320_v24  ;;  %v1333_v24 = vld [vmem:[%s1995_s6 + $0x1] ss:$0 sm:$0xff] }
 0x9f0   :  { %816 = vmatpush.msra.mxu1 %v1321_v25 }
 0x9f1   :  { %1272 = vmatmul.msk.f32.vlgmr.msra.gmra.mxu1 %vm239_vm1, %v787_v26 }
 0x9f9   :  { %1273 = vmatmul.msk.f32.gmra.mxu1 %vm239_vm1, %v788_v30 }
 0xa5d   :  { %v916_v31 = vpop.f32.mrf.mxu2 }
 0xa5e   :  { %924 = vrot.lane.b32.xlu1 %v916_v31, %s1547_s26 }
 0xa65   :  { %v919_v32 = vpop.f32.mrf.mxu2 }
 0xa66   :  { %926 = vrot.lane.b32.xlu2 %v919_v32, %s1547_s26 }
 0xa6e   :  { %v818_v37 = vpop.f32.mrf.mxu1 }
 0xa76   :  { %v821_v41 = vpop.f32.mrf.mxu1 }
 0xac0   :  { %v927_v40 = vpop.permute.xlu2 %926 }
 0xac1   :  { %v931_v42 = vsel %vm239_vm1, %v821_v41, %v927_v40 }
 0xad0   :  { %v925_v38 = vpop.permute.xlu1 %924 }
 0xad1   :  { %v930_v39 = vsel %vm239_vm1, %v818_v37, %v925_v38  ;;  %v1256_v37 = vld [vmem:[%s1998_s9 + $0x48] sm:$0xff]  ;;  %v1255_v38 = vld [vmem:[%s1998_s9 + $0x40] sm:$0xff] }
 0xad2   :  { %1280 = vmatmul.msk.f32.vlgmr.msrb.gmra.mxu0 %vm203_vm0, %v930_v39  ;;  %1077 = vmatpush.msrb.mxu3 %v1256_v37  ;;  %v1334_v39 = vld [vmem:[#allocation8 + $0x1] ss:$0 sm:$0xff] }
 0xad4   :  { %1078 = vmatpush.msrb.mxu3 %v1255_v38 }
 0xada   :  { %1281 = vmatmul.msk.f32.gmra.mxu0 %vm203_vm0, %v931_v42 }
 0xb4f   :  { %v958_v4 = vpop.f32.mrf.mxu0 }
 0xb50   :  { %v959_v45 = vadd.f32 %v1331_v43, %v958_v4 }
 0xb52   :  { %v964_v46 = vadd.f32 %v959_v45, %v1835_v23 }
 0xb54   :  { %v966_v47 = vsel %vm203_vm0, %v964_v46, 0.0 }
 0xb55   :  { %967 = vadd.xlane.f32.xlu0 %v966_v47 }
 0xb57   :  { %v961_v5 = vpop.f32.mrf.mxu0 }
 0xb58   :  { %v962_v48 = vadd.f32 %v1331_v43, %v961_v5 }
 0xb5a   :  { %v965_v49 = vadd.f32 %v962_v48, %v1839_v28  ;;  %v1254_v28 = vld [vmem:[%s1996_s7 + $0x38] sm:$0xff] }
 0xb5b   :  { %1041 = vmatpush.msrb.mxu1 %v1254_v28 }
 0xb5c   :  { %v969_v50 = vsel %vm203_vm0, %v965_v49, 0.0 }
 0xb5d   :  { %970 = vadd.xlane.f32.xlu2 %v969_v50  ;;  %1042 = vmatpush.msrb.mxu1 %v1253_v59 }
 0xb5f   :  { %1043 = vmatpush.msrb.mxu1 %v1252_v60 }
 0xb61   :  { %1044 = vmatpush.msrb.mxu1 %v1251_v61 }
 0xbc8   :  { %v968_v51 = vpop.xlane.xlu0 %967 }
 0xbc9   :  { %v972_v22 = vmul.f32 %v968_v51, %v1755_v44 }
 0xbcb   :  { %v974_v52 = vsub.f32 %v964_v46, %v972_v22  ;;  %v1335_v46 = vld [vmem:[%s1999_s10 + $0x1] ss:$0 sm:$0xff] }
 0xbcd   :  { %v976_v53 = vmul.f32 %v974_v52, %v974_v52 }
 0xbcf   :  { %v978_v54 = vsel %vm203_vm0, %v976_v53, 0.0 }
 0xbd0   :  { %v971_v55 = vpop.xlane.xlu2 %970  ;;  %979 = vadd.xlane.f32.xlu1 %v978_v54 }
 0xbd1   :  { %v973_v23 = vmul.f32 %v971_v55, %v1755_v44 }
 0xbd3   :  { %v975_v56 = vsub.f32 %v965_v49, %v973_v23 }
 0xbd5   :  { %v977_v57 = vmul.f32 %v975_v56, %v975_v56 }
 0xbd7   :  { %v981_v58 = vsel %vm203_vm0, %v977_v57, 0.0 }
 0xbd8   :  { %982 = vadd.xlane.f32.xlu0 %v981_v58 }
 0xc43   :  { %v980_v29 = vpop.xlane.xlu1 %979 }
 0xc44   :  { %v984_v62 = vmul.f32 %v980_v29, %v1755_v44 }
 0xc46   :  { %v986_v63 = vadd.f32 1e-05, %v984_v62 }
 0xc48   :  { %1382 = vrsqrt.f32 %v986_v63  ;;  %vm994_vm2 = vweird.f32 %v986_v63 }
 0xc4b   :  { %v983_v3 = vpop.xlane.xlu0 %982 }
 0xc4c   :  { %v985_v6 = vmul.f32 %v983_v3, %v1755_v44 }
 0xc4e   :  { %v1383_v8 = vpop.eup %1382  ;;  %v987_v9 = vadd.f32 1e-05, %v985_v6 }
 0xc4f   :  { %v989_v11 = vmul.f32 %v1383_v8, %v986_v63  ;;  %vm995_vm1 = vweird.f32 %v1383_v8 }
 0xc50   :  { %1384 = vrsqrt.f32 %v987_v9  ;;  %vm996_vm3 = vmor %vm994_vm2, %vm995_vm1  ;;  %vm1004_vm7 = vweird.f32 %v987_v9 }
 0xc51   :  { %v990_v12 = vmul.f32 %v1383_v8, %v989_v11 }
 0xc53   :  { %v991_v13 = vmul.f32 0.5, %v990_v12  ;;  %v1336_v12 = vld [vmem:[%s2000_s11 + $0x1] ss:$0 sm:$0xff] }
 0xc55   :  { %v992_v14 = vsub.f32 1.5, %v991_v13 }
 0xc56   :  { %v1385_v15 = vpop.eup %1384 }
 0xc57   :  { %v993_v16 = vmul.f32 %v1383_v8, %v992_v14  ;;  %v999_v17 = vmul.f32 %v1385_v15, %v987_v9  ;;  %vm1005_vm6 = vweird.f32 %v1385_v15 }
 0xc58   :  { %vm1006_vm8 = vmor %vm1004_vm7, %vm1005_vm6 }
 0xc59   :  { %v997_v19 = vsel %vm996_vm3, %v1383_v8, %v993_v16  ;;  %v1000_v20 = vmul.f32 %v1385_v15, %v999_v17  ;;  %v1337_v16 = vld [vmem:[%s2001_s12 + $0x1] ss:$0 sm:$0xff] }
 0xc5a   :  { %v1008_v21 = vmul.f32 %v997_v19, %v974_v52 }
 0xc5b   :  { %v1001_v25 = vmul.f32 0.5, %v1000_v20 }
 0xc5c   :  { %v1013_v26 = vmul.f32 %v1332_v18, %v1008_v21 }
 0xc5d   :  { %v1002_v27 = vsub.f32 1.5, %v1001_v25 }
 0xc5e   :  { %v1018_v30 = vadd.f32 %v1333_v24, %v1013_v26 }
 0xc5f   :  { %v1003_v31 = vmul.f32 %v1385_v15, %v1002_v27 }
 0xc60   :  { %1282 = vmatmul.msk.f32.vlgmr.msrb.gmra.mxu1 %vm203_vm0, %v1018_v30 }
 0xc61   :  { %v1007_v32 = vsel %vm1006_vm8, %v1385_v15, %v1003_v31 }
 0xc62   :  { %v1009_v33 = vmul.f32 %v1007_v32, %v975_v56 }
 0xc64   :  { %v1014_v34 = vmul.f32 %v1332_v18, %v1009_v33 }
 0xc66   :  { %v1019_v35 = vadd.f32 %v1333_v24, %v1014_v34 }
 0xc68   :  { %1283 = vmatmul.msk.f32.gmra.mxu1 %vm203_vm0, %v1019_v35 }
 0xcdd   :  { %v1046_v40 = vpop.f32.mrf.mxu1 }
 0xcde   :  { %v1047_v41 = vadd.f32 %v1334_v39, %v1046_v40 }
 0xce0   :  { %v1052_v42 = vmax.f32 %v1047_v41, 0.0 }
 0xce2   :  { %1284 = vmatmul.msk.f32.vlgmr.msrb.gmra.mxu3 %vm570_vm11, %v1052_v42 }
 0xce5   :  { %v1049_v43 = vpop.f32.mrf.mxu1 }
 0xce6   :  { %v1050_v4 = vadd.f32 %v1334_v39, %v1049_v43 }
 0xce8   :  { %v1053_v45 = vmax.f32 %v1050_v4, 0.0 }
 0xcea   :  { %1285 = vmatmul.msk.f32.gmra.mxu3 %vm570_vm11, %v1053_v45 }
 0xd65   :  { %v1080_v47 = vpop.f32.mrf.mxu3 }
 0xd66   :  { %v1081_v5 = vadd.f32 %v1335_v46, %v1080_v47 }
 0xd68   :  { %v1086_v48 = vadd.f32 %v1081_v5, %v1018_v30 }
 0xd6a   :  { %v1088_v49 = vsel %vm203_vm0, %v1086_v48, 0.0 }
 0xd6b   :  { %1089 = vadd.xlane.f32.xlu2 %v1088_v49 }
 0xd6d   :  { %v1083_v50 = vpop.f32.mrf.mxu3 }
 0xd6e   :  { %v1084_v51 = vadd.f32 %v1335_v46, %v1083_v50 }
 0xd70   :  { %v1087_v22 = vadd.f32 %v1084_v51, %v1019_v35 }
 0xd72   :  { %v1091_v52 = vsel %vm203_vm0, %v1087_v22, 0.0 }
 0xd73   :  { %1092 = vadd.xlane.f32.xlu0 %v1091_v52 }
 0xdde   :  { %v1090_v53 = vpop.xlane.xlu2 %1089 }
 0xddf   :  { %v1094_v54 = vmul.f32 %v1090_v53, %v1755_v44 }
 0xde1   :  { %v1096_v55 = vsub.f32 %v1086_v48, %v1094_v54  ;;  %v1338_v54 = vld [vmem:[%s2002_s13] ss:$0 sm:$0xff] }
 0xde3   :  { %v1098_v23 = vmul.f32 %v1096_v55, %v1096_v55 }
 0xde5   :  { %v1100_v56 = vsel %vm203_vm0, %v1098_v23, 0.0 }
 0xde6   :  { %1101 = vadd.xlane.f32.xlu2 %v1100_v56  ;;  %v1093_v57 = vpop.xlane.xlu0 %1092  ;;  %v1339_v56 = vld [vmem:[#allocation10] ss:$0 sm:$0xff] }
 0xde7   :  { %v1095_v58 = vmul.f32 %v1093_v57, %v1755_v44 }
 0xde9   :  { %v1097_v28 = vsub.f32 %v1087_v22, %v1095_v58 }
 0xdeb   :  { %v1099_v59 = vmul.f32 %v1097_v28, %v1097_v28 }
 0xded   :  { %v1103_v60 = vsel %vm203_vm0, %v1099_v59, 0.0 }
 0xdee   :  { %1104 = vadd.xlane.f32.xlu1 %v1103_v60 }
 0xe59   :  { %v1102_v61 = vpop.xlane.xlu2 %1101 }
 0xe5a   :  { %v1106_v29 = vmul.f32 %v1102_v61, %v1755_v44 }
 0xe5c   :  { %v1108_v62 = vadd.f32 1e-05, %v1106_v29 }
 0xe5e   :  { %1386 = vrsqrt.f32 %v1108_v62  ;;  %vm1116_vm10 = vweird.f32 %v1108_v62 }
 0xe61   :  { %v1105_v63 = vpop.xlane.xlu1 %1104 }
 0xe62   :  { %v1107_v0 = vmul.f32 %v1105_v63, %v1755_v44 }
 0xe64   :  { %v1387_v1 = vpop.eup %1386  ;;  %v1109_v2 = vadd.f32 1e-05, %v1107_v0 }
 0xe65   :  { %v1111_v3 = vmul.f32 %v1387_v1, %v1108_v62  ;;  %vm1117_vm9 = vweird.f32 %v1387_v1 }
 0xe66   :  { %1388 = vrsqrt.f32 %v1109_v2  ;;  %vm1118_vm11 = vmor %vm1116_vm10, %vm1117_vm9  ;;  %vm1126_vm13 = vweird.f32 %v1109_v2 }
 0xe67   :  { %v1112_v6 = vmul.f32 %v1387_v1, %v1111_v3 }
 0xe69   :  { %v1113_v7 = vmul.f32 0.5, %v1112_v6 }
 0xe6b   :  { %v1114_v8 = vsub.f32 1.5, %v1113_v7 }
 0xe6c   :  { %v1389_v9 = vpop.eup %1388 }
 0xe6d   :  { %v1115_v10 = vmul.f32 %v1387_v1, %v1114_v8  ;;  %v1121_v11 = vmul.f32 %v1389_v9, %v1109_v2  ;;  %vm1127_vm12 = vweird.f32 %v1389_v9 }
 0xe6e   :  { %vm1128_vm14 = vmor %vm1126_vm13, %vm1127_vm12 }
 0xe6f   :  { %v1122_v13 = vmul.f32 %v1389_v9, %v1121_v11  ;;  %v1119_v14 = vsel %vm1118_vm11, %v1387_v1, %v1115_v10 }
 0xe70   :  { %v1130_v15 = vmul.f32 %v1119_v14, %v1096_v55 }
 0xe71   :  { %v1123_v17 = vmul.f32 0.5, %v1122_v13 }
 0xe72   :  { %v1135_v18 = vmul.f32 %v1336_v12, %v1130_v15 }
 0xe73   :  { %v1124_v19 = vsub.f32 1.5, %v1123_v17 }
 0xe74   :  { %v1140_v20 = vadd.f32 %v1337_v16, %v1135_v18 }
 0xe75   :  { %v1125_v21 = vmul.f32 %v1389_v9, %v1124_v19 }
 0xe76   :  { %v1144_v24 = vsel %vm203_vm0, %v1140_v20, 0.0 }
 0xe77   :  { %1145 = vadd.xlane.f32.xlu0 %v1144_v24  ;;  %v1129_v25 = vsel %vm1128_vm14, %v1389_v9, %v1125_v21 }
 0xe78   :  { %v1131_v26 = vmul.f32 %v1129_v25, %v1097_v28 }
 0xe7a   :  { %v1136_v27 = vmul.f32 %v1336_v12, %v1131_v26 }
 0xe7c   :  { %v1141_v30 = vadd.f32 %v1337_v16, %v1136_v27 }
 0xe7e   :  { %v1147_v31 = vsel %vm203_vm0, %v1141_v30, 0.0 }
 0xe7f   :  { %1148 = vadd.xlane.f32.xlu2 %v1147_v31 }
 0xeea   :  { %v1146_v32 = vpop.xlane.xlu0 %1145 }
 0xeeb   :  { %v1150_v33 = vmul.f32 %v1146_v32, %v1755_v44 }
 0xeed   :  { %v1152_v34 = vsub.f32 %v1140_v20, %v1150_v33 }
 0xeef   :  { %v1154_v35 = vmul.f32 %v1152_v34, %v1152_v34 }
 0xef1   :  { %v1156_v36 = vsel %vm203_vm0, %v1154_v35, 0.0 }
 0xef2   :  { %v1149_v37 = vpop.xlane.xlu2 %1148  ;;  %1157 = vadd.xlane.f32.xlu1 %v1156_v36 }
 0xef3   :  { %v1151_v38 = vmul.f32 %v1149_v37, %v1755_v44 }
 0xef5   :  { %v1153_v39 = vsub.f32 %v1141_v30, %v1151_v38 }
 0xef7   :  { %v1155_v40 = vmul.f32 %v1153_v39, %v1153_v39 }
 0xef9   :  { %v1159_v41 = vsel %vm203_vm0, %v1155_v40, 0.0 }
 0xefa   :  { %1160 = vadd.xlane.f32.xlu0 %v1159_v41 }
 0xf65   :  { %v1158_v42 = vpop.xlane.xlu1 %1157 }
 0xf66   :  { %v1162_v43 = vmul.f32 %v1158_v42, %v1755_v44 }
 0xf68   :  { %v1164_v4 = vadd.f32 1e-05, %v1162_v43 }
 0xf6a   :  { %1390 = vrsqrt.f32 %v1164_v4  ;;  %vm1172_vm4 = vweird.f32 %v1164_v4 }
 0xf6d   :  { %v1161_v45 = vpop.xlane.xlu0 %1160 }
 0xf6e   :  { %v1163_v46 = vmul.f32 %v1161_v45, %v1755_v44 }
 0xf70   :  { %v1391_v47 = vpop.eup %1390  ;;  %v1165_v5 = vadd.f32 1e-05, %v1163_v46 }
 0xf71   :  { %v1167_v48 = vmul.f32 %v1391_v47, %v1164_v4  ;;  %vm1173_vm15 = vweird.f32 %v1391_v47 }
 0xf72   :  { %1392 = vrsqrt.f32 %v1165_v5  ;;  %vm1174_vm5 = vmor %vm1172_vm4, %vm1173_vm15  ;;  %vm1182_vm2 = vweird.f32 %v1165_v5 }
 0xf73   :  { %v1168_v49 = vmul.f32 %v1391_v47, %v1167_v48 }
 0xf75   :  { %v1169_v50 = vmul.f32 0.5, %v1168_v49 }
 0xf77   :  { %v1170_v51 = vsub.f32 1.5, %v1169_v50 }
 0xf78   :  { %v1393_v22 = vpop.eup %1392 }
 0xf79   :  { %v1171_v52 = vmul.f32 %v1391_v47, %v1170_v51  ;;  %v1177_v53 = vmul.f32 %v1393_v22, %v1165_v5  ;;  %vm1183_vm1 = vweird.f32 %v1393_v22 }
 0xf7a   :  { %vm1184_vm3 = vmor %vm1182_vm2, %vm1183_vm1 }
 0xf7b   :  { %v1175_v55 = vsel %vm1174_vm5, %v1391_v47, %v1171_v52  ;;  %v1178_v23 = vmul.f32 %v1393_v22, %v1177_v53 }
 0xf7c   :  { %v1186_v44 = vmul.f32 %v1175_v55, %v1152_v34 }
 0xf7d   :  { %v1179_v57 = vmul.f32 0.5, %v1178_v23 }
 0xf7e   :  { %v1191_v58 = vmul.f32 %v1338_v54, %v1186_v44 }
 0xf7f   :  { %v1180_v28 = vsub.f32 1.5, %v1179_v57 }
 0xf80   :  { %v1196_v59 = vadd.f32 %v1339_v56, %v1191_v58 }
 0xf81   :  { %v1181_v60 = vmul.f32 %v1393_v22, %v1180_v28 }
 0xf82   :  { %1198 = vst.msk [vmem:[#allocation11] sm:$0xff] %vm203_vm0, %v1196_v59 }
 0xf83   :  { %v1185_v61 = vsel %vm1184_vm3, %v1393_v22, %v1181_v60 }
 0xf84   :  { %v1187_v29 = vmul.f32 %v1185_v61, %v1153_v39 }
 0xf86   :  { %v1192_v62 = vmul.f32 %v1338_v54, %v1187_v29 }
 0xf88   :  { %v1197_v63 = vadd.f32 %v1339_v56, %v1192_v62 }
 0xf8a   :  { %1199 = vst.msk [vmem:[#allocation11 + $0x8] sm:$0xff] %vm203_vm0, %v1197_v63 }
 0xf8b   :  { %1212 = dma.vmem_to_hbm [thread:$0]  %s1205_s18, 256, %s1207_s28, [#allocation4], %s1551_s20, %s1551_s20, %s1552_s22  }
 0xf8c   :  { %1544 = dma.done.wait [#allocation4], 256  }
 0xf8d   :  { %1545 = vsyncadd [#allocation4], 4294967040 }
 0xf8e   :  { %1217 = vsyncpa [#allocation3], 1 }
 0xf8f   :  { %1218 = vsyncpa [#allocation6], 1 }
 0xf90   :  { %1219 = vsyncpa [#allocation9], 1 }
 0xf91   :  { %1220 = vsyncpa [#allocation4], 1 }

</bundles_post_ra>
